<compile_context>
chip_gen: v7x
topology: tpu7x:2x2x1
jax: 0.10.0
libtpu: 0.0.40
codegen_flags: <defaults>
</compile_context>

<pallas_src>
from functools import partial

import jax
import jax.numpy as jnp
from jax.experimental import pallas as pl
from jax.experimental.pallas import tpu as pltpu


def _round_up(x, m):
    return (x + m - 1) // m * m


def _supports_buffered():
    # Static, construction-only probe (never executes a kernel).
    try:
        pl.BlockSpec((8, 128), lambda i: (0, 0), pipeline_mode=pl.Buffered(1))
        return True
    except Exception:
        return False


_HAS_BUFFERED = _supports_buffered()


def _choose_tm(n_rows, tm_max=2048, tm_min=512, target_steps=8):
    # Large tiles amortize the ~0.35us per-grid-step overhead; cap tm so big
    # batches still give >= target_steps steps (v7x megacore + DMA/compute
    # overlap), but never drop below tm_min (tile-sweep knee ~512-1024 rows).
    tm = _round_up(pl.cdiv(n_rows, target_steps), 16)   # 16: bf16 sublane packing
    tm = max(min(tm, tm_max), tm_min)
    tm = min(tm, _round_up(n_rows, 16))                 # no bigger than batch
    return max(16, tm)


def _vmem_budget(tm, d, single_buffer_weights):
    x_bytes = 2 * tm * d * 4                       # f32 X tile, double-buffered
    o_bytes = 2 * tm * d * 2                       # bf16 out tile, double-buffered
    wmult = 1 if single_buffer_weights else 2
    w_bytes = wmult * ((d * 2 * d + d * d) * 2 + (2 * d + d) * 4)
    budget = 2 * (x_bytes + o_bytes + w_bytes) + (8 << 20)   # 2x + 8 MiB headroom
    return int(min(max(budget, 16 << 20), 48 << 20))          # fits v7x's 64 MiB


def mydnn_kernel(x_ref, wc_ref, bc_ref, w2_ref, b2_ref, o_ref):
    d_out = w2_ref.shape[0]  # hidden width D

    # X arrives f32; cast to bf16 on the VPU (plenty of slack) for the MXU.
    x = x_ref[...].astype(jnp.bfloat16)            # (tm, D)

    # Fused first dnn layer + scale-net layer: one (tm, D) @ (D, 2D) MXU pass.
    # (At D=128 the 256-deep MXU contraction is half-filled on v6e/v7x, but
    #  the kernel is memory-bound at this width so it costs nothing.)
    t = jnp.dot(x, wc_ref[...], preferred_element_type=jnp.float32) + bc_ref[...]
    h = jnp.maximum(t[:, :d_out], 0.0)             # dnn hidden, f32 (ReLU)
    theta = jax.nn.sigmoid(t[:, d_out:])           # scale-net gate, f32

    # Second dnn layer: bf16 operands, f32 accumulation.
    d = jnp.dot(h.astype(jnp.bfloat16), w2_ref[...],
                preferred_element_type=jnp.float32) + b2_ref[...]

    # Gated output: theta * dnn(X), stored bf16 to halve writeback traffic.
    o_ref[...] = (theta * d).astype(o_ref.dtype)


def _build_call(n_rows, d, tm, single_buffer_weights):
    grid = (pl.cdiv(n_rows, tm),)
    n_eff = grid[0] * tm

    const_map = lambda i: (0, 0)  # weights / biases: same block every step
    if single_buffer_weights:
        w_spec = lambda shape: pl.BlockSpec(shape, const_map,
                                            pipeline_mode=pl.Buffered(1))
    else:
        w_spec = lambda shape: pl.BlockSpec(shape, const_map)

    cost = pl.CostEstimate(
        flops=2 * n_eff * d * (2 * d) + 2 * n_eff * d * d,   # fused + 2nd matmul
        transcendentals=n_eff * d,                           # sigmoid
        bytes_accessed=(n_rows * d * 4                       # X read (f32)
                        + n_rows * d * 2                     # out write (bf16)
                        + (d * 2 * d + d * d) * 2            # weights (bf16, once)
                        + (2 * d + d) * 4),                  # biases (f32, once)
    )

    return pl.pallas_call(
        mydnn_kernel,
        out_shape=jax.ShapeDtypeStruct((n_rows, d), jnp.bfloat16),
        grid_spec=pltpu.PrefetchScalarGridSpec(
            num_scalar_prefetch=0,
            grid=grid,
            in_specs=[
                pl.BlockSpec((tm, d), lambda i: (i, 0)),   # X tile (f32)
                w_spec((d, 2 * d)),                        # [W1 | Ws] (bf16)
                w_spec((1, 2 * d)),                        # [b1 | bs] (f32)
                w_spec((d, d)),                            # W2        (bf16)
                w_spec((1, d)),                            # b2        (f32)
            ],
            out_specs=pl.BlockSpec((tm, d), lambda i: (i, 0)),
        ),
        compiler_params=pltpu.CompilerParams(
            dimension_semantics=("parallel",),
            vmem_limit_bytes=_vmem_budget(tm, d, single_buffer_weights),
        ),
        cost_estimate=cost,
    )


def prepare_params(w1, b1, w2, b2, ws, bs):
    """One-time parameter prep (hoisted out of the per-call path).

    Fuses the two matmuls that share X: [W1 | Ws] -> (D, 2D), [b1 | bs] -> (1, 2D).
    """
    wc = jnp.concatenate([w1, ws], axis=1).astype(jnp.bfloat16)
    bc = jnp.concatenate([b1, bs], axis=1).astype(jnp.float32)
    return wc, bc, w2.astype(jnp.bfloat16), b2.astype(jnp.float32)


@partial(jax.jit, static_argnames=("tm",))
def mydnn_forward(x, wc, bc, w2b, b2f, *, tm=None):
    N, D = x.shape
    if tm is None:
        tm = _choose_tm(N)
    call = _build_call(N, D, tm, _HAS_BUFFERED)
    # No padding: partial last block's OOB rows are never written back.
    return call(x.astype(jnp.float32), wc, bc, w2b, b2f)


def reference_forward(x, w1, b1, w2, b2, ws, bs):
    # Pure-JAX reference mirroring the kernel's precision choices
    # (bf16 matmul operands, f32 accumulation / elementwise).
    bf16 = jnp.bfloat16
    xb, w1b, w2b, wsb = (a.astype(bf16) for a in (x, w1, w2, ws))
    h = jnp.maximum(jnp.dot(xb, w1b, preferred_element_type=jnp.float32) + b1, 0.0)
    d = jnp.dot(h.astype(bf16), w2b, preferred_element_type=jnp.float32) + b2
    theta = jax.nn.sigmoid(jnp.dot(xb, wsb, preferred_element_type=jnp.float32) + bs)
    return theta * d


if __name__ == "__main__":
    key = jax.random.PRNGKey(0)
    N, D = 512, 128  # small test shapes; production batches get 8+ grid steps

    k = jax.random.split(key, 7)
    scale = 1.0 / jnp.sqrt(D)
    x  = jax.random.normal(k[0], (N, D), dtype=jnp.float32)
    w1 = jax.random.normal(k[1], (D, D), dtype=jnp.float32) * scale
    b1 = jax.random.normal(k[2], (1, D), dtype=jnp.float32) * 0.1
    w2 = jax.random.normal(k[3], (D, D), dtype=jnp.float32) * scale
    b2 = jax.random.normal(k[4], (1, D), dtype=jnp.float32) * 0.1
    ws = jax.random.normal(k[5], (D, D), dtype=jnp.float32) * scale
    bs = jax.random.normal(k[6], (1, D), dtype=jnp.float32) * 0.1

    # Parameter prep happens once, outside the hot path.
    wc, bc, w2b, b2f = prepare_params(w1, b1, w2, b2, ws, bs)

    out = mydnn_forward(x, wc, bc, w2b, b2f)
    out = jax.block_until_ready(out)

    ref = reference_forward(x, w1, b1, w2, b2, ws, bs)
    assert out.shape == (N, D)
    assert out.dtype == jnp.bfloat16  # output contract: bf16 (halves writeback)
    err = jnp.max(jnp.abs(out.astype(jnp.float32) - ref))
    # Tolerance widened for the bf16 output quantization (~0.4% relative).
    assert jnp.allclose(out.astype(jnp.float32), ref, atol=2e-2, rtol=2e-2), float(err)

    print("KERNEL_OK")
</pallas_src>

<mosaic_0001>
module attributes {stable_mosaic.version = 11 : i64} {
  func.func @mydnn_kernel(%arg0: i32, %arg1: memref<512x128xf32, #tpu.memory_space<vmem>>, %arg2: memref<128x256xbf16, #tpu.memory_space<vmem>>, %arg3: memref<1x256xf32, #tpu.memory_space<vmem>>, %arg4: memref<128x128xbf16, #tpu.memory_space<vmem>>, %arg5: memref<1x128xf32, #tpu.memory_space<vmem>>, %arg6: memref<512x128xbf16, #tpu.memory_space<vmem>>) attributes {dimension_semantics = [#tpu.dimension_semantics<parallel>], iteration_bounds = array<i64: 1>, scalar_prefetch = 0 : i64, scratch_operands = 0 : i64, tpu.core_type = #tpu.core_type<tc>, window_params = [{transform_indices = @transform_0, window_bounds = array<i64: 512, 128>}, {pipeline_mode = #tpu.pipeline_mode<synchronous>, transform_indices = @transform_1, window_bounds = array<i64: 128, 256>}, {pipeline_mode = #tpu.pipeline_mode<synchronous>, transform_indices = @transform_2, window_bounds = array<i64: 1, 256>}, {pipeline_mode = #tpu.pipeline_mode<synchronous>, transform_indices = @transform_3, window_bounds = array<i64: 128, 128>}, {pipeline_mode = #tpu.pipeline_mode<synchronous>, transform_indices = @transform_4, window_bounds = array<i64: 1, 128>}, {transform_indices = @transform_5, window_bounds = array<i64: 512, 128>}]} {
    %c0 = arith.constant 0 : index
    %c0_0 = arith.constant 0 : index
    %0 = vector.load %arg1[%c0, %c0_0] : memref<512x128xf32, #tpu.memory_space<vmem>>, vector<512x128xf32>
    %1 = arith.truncf %0 : vector<512x128xf32> to vector<512x128xbf16>
    %c0_1 = arith.constant 0 : index
    %c0_2 = arith.constant 0 : index
    %2 = vector.load %arg2[%c0_1, %c0_2] : memref<128x256xbf16, #tpu.memory_space<vmem>>, vector<128x256xbf16>
    %cst = arith.constant dense<0.000000e+00> : vector<512x256xf32>
    %3 = tpu.matmul %1, %2, %cst {dimension_numbers = #tpu.dot_dimension_numbers<[1], [0], [0], [1], [0, 0, 1, 1], [], []>} : vector<512x128xbf16>, vector<128x256xbf16>, vector<512x256xf32> -> vector<512x256xf32>
    %c0_3 = arith.constant 0 : index
    %c0_4 = arith.constant 0 : index
    %4 = vector.load %arg3[%c0_3, %c0_4] : memref<1x256xf32, #tpu.memory_space<vmem>>, vector<1x256xf32>
    %5 = vector.broadcast %4 : vector<1x256xf32> to vector<512x256xf32>
    %6 = arith.addf %3, %5 : vector<512x256xf32>
    %7 = vector.extract_strided_slice %6 {offsets = [0, 0], sizes = [512, 128], strides = [1, 1]} : vector<512x256xf32> to vector<512x128xf32>
    %cst_5 = arith.constant 0.000000e+00 : f32
    %8 = vector.broadcast %cst_5 : f32 to vector<512x128xf32>
    %9 = arith.maximumf %7, %8 : vector<512x128xf32>
    %10 = vector.extract_strided_slice %6 {offsets = [0, 128], sizes = [512, 128], strides = [1, 1]} : vector<512x256xf32> to vector<512x128xf32>
    %11 = arith.negf %10 : vector<512x128xf32>
    %12 = math.exp %11 : vector<512x128xf32>
    %cst_6 = arith.constant 1.000000e+00 : f32
    %13 = vector.broadcast %cst_6 : f32 to vector<512x128xf32>
    %14 = arith.addf %13, %12 : vector<512x128xf32>
    %15 = arith.divf %13, %14 : vector<512x128xf32>
    %16 = arith.truncf %9 : vector<512x128xf32> to vector<512x128xbf16>
    %c0_7 = arith.constant 0 : index
    %c0_8 = arith.constant 0 : index
    %17 = vector.load %arg4[%c0_7, %c0_8] : memref<128x128xbf16, #tpu.memory_space<vmem>>, vector<128x128xbf16>
    %cst_9 = arith.constant dense<0.000000e+00> : vector<512x128xf32>
    %18 = tpu.matmul %16, %17, %cst_9 {dimension_numbers = #tpu.dot_dimension_numbers<[1], [0], [0], [1], [0, 0, 1, 1], [], []>} : vector<512x128xbf16>, vector<128x128xbf16>, vector<512x128xf32> -> vector<512x128xf32>
    %c0_10 = arith.constant 0 : index
    %c0_11 = arith.constant 0 : index
    %19 = vector.load %arg5[%c0_10, %c0_11] : memref<1x128xf32, #tpu.memory_space<vmem>>, vector<1x128xf32>
    %20 = vector.broadcast %19 : vector<1x128xf32> to vector<512x128xf32>
    %21 = arith.addf %18, %20 : vector<512x128xf32>
    %22 = arith.mulf %15, %21 : vector<512x128xf32>
    %23 = arith.truncf %22 : vector<512x128xf32> to vector<512x128xbf16>
    %c0_12 = arith.constant 0 : index
    %c0_13 = arith.constant 0 : index
    %24 = vector.load %arg6[%c0_12, %c0_13] : memref<512x128xbf16, #tpu.memory_space<vmem>>, vector<512x128xbf16>
    tpu.vector_store %arg6[%c0_12, %c0_13], %23 {strides = array<i32>} : memref<512x128xbf16, #tpu.memory_space<vmem>>, vector<512x128xbf16>,
    return
  }
  func.func @transform_0(%arg0: i32) -> (i32, i32) {
    %c0_i32 = arith.constant 0 : i32
    %c0_i32_0 = arith.constant 0 : i32
    return %arg0, %c0_i32 : i32, i32
  }
  func.func @transform_1(%arg0: i32) -> (i32, i32) {
    %c0_i32 = arith.constant 0 : i32
    %c0_i32_0 = arith.constant 0 : i32
    %c0_i32_1 = arith.constant 0 : i32
    return %c0_i32, %c0_i32_0 : i32, i32
  }
  func.func @transform_2(%arg0: i32) -> (i32, i32) {
    %c0_i32 = arith.constant 0 : i32
    %c0_i32_0 = arith.constant 0 : i32
    %c0_i32_1 = arith.constant 0 : i32
    return %c0_i32, %c0_i32_0 : i32, i32
  }
  func.func @transform_3(%arg0: i32) -> (i32, i32) {
    %c0_i32 = arith.constant 0 : i32
    %c0_i32_0 = arith.constant 0 : i32
    %c0_i32_1 = arith.constant 0 : i32
    return %c0_i32, %c0_i32_0 : i32, i32
  }
  func.func @transform_4(%arg0: i32) -> (i32, i32) {
    %c0_i32 = arith.constant 0 : i32
    %c0_i32_0 = arith.constant 0 : i32
    %c0_i32_1 = arith.constant 0 : i32
    return %c0_i32, %c0_i32_0 : i32, i32
  }
  func.func @transform_5(%arg0: i32) -> (i32, i32) {
    %c0_i32 = arith.constant 0 : i32
    %c0_i32_0 = arith.constant 0 : i32
    return %arg0, %c0_i32 : i32, i32
  }
}

</mosaic_0001>

<bundles_post_ra>
// kernel: mydnn_forward.1
= control target key start
LH: loop header
LB: loop body
LE: loop exit
PB: predicated region body
PF: predicated region fallthrough
CT: control target
= control target key end

     0   :  { %10 = vsyncpa [#allocation3], 0  ;;  %s3363_s0 = inlined_call_operand.hbm [shape: f32[512,128], index: 0, kind: input, shape index: {}]   ;;  %s3364_s1 = inlined_call_operand.hbm [shape: bf16[128,256], index: 1, kind: input, shape index: {}]   ;;  %s3365_s2 = inlined_call_operand.vmem [shape: f32[1,256], index: 2, kind: input, shape index: {}]   ;;  %s3366_s3 = inlined_call_operand.hbm [shape: bf16[128,128], index: 3, kind: input, shape index: {}]   ;;  %s3367_s4 = inlined_call_operand.vmem [shape: f32[1,128], index: 4, kind: input, shape index: {}]   ;;  %s3368_s5 = inlined_call_operand.hbm [shape: bf16[512,128], index: 5, kind: output, shape index: {}]  }
   0x1   :  { %11 = vsyncpa [#allocation6], 0 }
   0x2   :  { %12 = vsyncpa [#allocation4], 0  ;;  %s2798_s18 = smov [#allocation5]   ;;  %s2799_s20 = smov [#allocation2]  }
   0x3   :  { %s30_s19 = sshll.u32 %s2798_s18, 4  ;;  %s18_s21 = sshll.u32 %s2799_s20, 4  ;;  %s31_s19 = int_to_ptr.vmem [resolvable:$true] %s30_s19  ;;  %s2837_s21 = int_to_ptr.vmem [resolvable:$true] %s18_s21 }
   0x4   :  { %s2704_s24 = scalar_lea.hbm %s3364_s1, 2048 }
   0x5   :  { %p2705_p0 = scmp.ne.s32.totalorder %s3364_s1, %s2704_s24  ;;  %p2708_p1 = scmp.lt.u32.totalorder %s2704_s24, %s3364_s1 }
   0x7   :  { %p2710_p2 = pnand %p2708_p1, %p2705_p0 }
   0x9   :  { %2713 = shalt.err (!%p2710_p2)
}
   0xa   :  { %s2714_s29 = scalar_lea.vmem %s31_s19, 2048  ;;  %p2719_p4 = scmp.lt.s32.totalorder %s31_s19, %s31_s19 }
   0xb   :  { %p2715_p3 = scmp.ne.s32.totalorder %s31_s19, %s2714_s29  ;;  %p2720_p5 = scmp.lt.s32.totalorder %s2714_s29, %s2714_s29 }
   0xd   :  { %p2721_p6 = por %p2720_p5, %p2719_p4 }
   0xf   :  { %p2722_p7 = pnand %p2721_p6, %p2715_p3 }
  0x11   :  { %2725 = shalt.err (!%p2722_p7)
}
  0x12   :  { %s2800_s30 = smov 128   ;;  %s2801_s6 = smov 8  }
  0x13   :  { %36 = dma.hbm_to_vmem [thread:$0]  %s3364_s1, 2048, %s31_s19, [#allocation6], %s2800_s30, %s2800_s30, %s2801_s6  }
  0x14   :  { %s2726_s11 = scalar_lea.hbm %s3363_s0, 8192 }
  0x15   :  { %p2727_p8 = scmp.ne.s32.totalorder %s3363_s0, %s2726_s11  ;;  %p2730_p9 = scmp.lt.u32.totalorder %s2726_s11, %s3363_s0 }
  0x17   :  { %p2732_p10 = pnand %p2730_p9, %p2727_p8 }
  0x19   :  { %2735 = shalt.err (!%p2732_p10)
}
  0x1a   :  { %s2736_s16 = scalar_lea.vmem %s2837_s21, 8192  ;;  %p2741_p12 = scmp.lt.s32.totalorder %s2837_s21, %s2837_s21 }
  0x1b   :  { %p2737_p11 = scmp.ne.s32.totalorder %s2837_s21, %s2736_s16  ;;  %p2742_p13 = scmp.lt.s32.totalorder %s2736_s16, %s2736_s16 }
  0x1d   :  { %p2743_p0 = por %p2742_p13, %p2741_p12 }
  0x1f   :  { %p2744_p1 = pnand %p2743_p0, %p2737_p11 }
  0x21   :  { %2747 = shalt.err (!%p2744_p1)
}
  0x22   :  { %24 = dma.hbm_to_vmem [thread:$0]  %s3363_s0, 8192, %s2837_s21, [#allocation3], %s2800_s30, %s2800_s30, %s2801_s6  }
  0x23   :  { %s2802_s18 = smov [#allocation7]   ;;  %s2748_s23 = scalar_lea.hbm %s3366_s3, 1024 }
  0x24   :  { %s44_s19 = sshll.u32 %s2802_s18, 4  ;;  %p2749_p2 = scmp.ne.s32.totalorder %s3366_s3, %s2748_s23  ;;  %s45_s19 = int_to_ptr.vmem [resolvable:$true] %s44_s19 }
  0x25   :  { %p2752_p3 = scmp.lt.u32.totalorder %s2748_s23, %s3366_s3 }
  0x27   :  { %p2754_p4 = pnand %p2752_p3, %p2749_p2 }
  0x29   :  { %2757 = shalt.err (!%p2754_p4)
}
  0x2a   :  { %s2758_s28 = scalar_lea.vmem %s45_s19, 1024  ;;  %p2763_p6 = scmp.lt.s32.totalorder %s45_s19, %s45_s19 }
  0x2b   :  { %p2759_p5 = scmp.ne.s32.totalorder %s45_s19, %s2758_s28  ;;  %p2764_p7 = scmp.lt.s32.totalorder %s2758_s28, %s2758_s28 }
  0x2d   :  { %p2765_p8 = por %p2764_p7, %p2763_p6 }
  0x2f   :  { %p2766_p9 = pnand %p2765_p8, %p2759_p5 }
  0x31   :  { %2769 = shalt.err (!%p2766_p9)
}
  0x32   :  { %s2803_s0 = smov 64   ;;  %s2804_s21 = smov 4  }
  0x33   :  { %50 = dma.hbm_to_vmem [thread:$0]  %s3366_s3, 1024, %s45_s19, [#allocation6], %s2803_s0, %s2803_s0, %s2804_s21  }
  0x34   :  { %2792 = dma.done.wait [#allocation3], 8192  }
  0x35   :  { %2793 = vsyncadd [#allocation3], 4294959104 }
  0x36   :  { %2794 = dma.done.wait [#allocation6], 3072  }
  0x37   :  { %2795 = vsyncadd [#allocation6], 4294964224  ;;  %v2805_v0 = vmov 0   ;;  %v2415_v1 = vld [vmem:[#allocation5 + $0x4] ss:$8 sps:$4 sm:$0xff]   ;;  %v65_v20 = vld [vmem:[#allocation2 + $0x10] sm:$0xff] }
  0x38   :  { %299 = vmatprep.mubr.bf16.mxu0 %v2805_v0  ;;  %539 = vmatprep.mubr.bf16.mxu1 %v2805_v0  ;;  %v2417_v2 = vld [vmem:[#allocation5] ss:$8 sps:$4 sm:$0xff]   ;;  %v2418_v3 = vld [vmem:[#allocation5 + $0x14] ss:$8 sps:$4 sm:$0xff]   ;;  %v2420_v4 = vld [vmem:[#allocation5 + $0x10] ss:$8 sps:$4 sm:$0xff]  }
  0x39   :  { %267 = vmatprep.subr.bf16.mxu0 %v2415_v1  ;;  %2390 = vmatprep.subr.bf16.mxu1 %v2415_v1  ;;  %v2421_v5 = vld [vmem:[#allocation5 + $0x24] ss:$8 sps:$4 sm:$0xff]   ;;  %v2423_v6 = vld [vmem:[#allocation5 + $0x20] ss:$8 sps:$4 sm:$0xff]   ;;  %v2424_v7 = vld [vmem:[#allocation5 + $0x34] ss:$8 sps:$4 sm:$0xff]  }
  0x3a   :  { %268 = vmatpush1.bf16.msra.mxu0 %v2417_v2  ;;  %2398 = vmatpush1.bf16.msra.mxu1 %v2417_v2  ;;  %v2426_v8 = vld [vmem:[#allocation5 + $0x30] ss:$8 sps:$4 sm:$0xff]   ;;  %v2427_v9 = vld [vmem:[#allocation5 + $0x44] ss:$8 sps:$4 sm:$0xff]   ;;  %v2429_v10 = vld [vmem:[#allocation5 + $0x40] ss:$8 sps:$4 sm:$0xff]  }
  0x3b   :  { %269 = vmatprep.subr.bf16.mxu0 %v2418_v3  ;;  %2391 = vmatprep.subr.bf16.mxu1 %v2418_v3  ;;  %v2430_v11 = vld [vmem:[#allocation5 + $0x54] ss:$8 sps:$4 sm:$0xff]   ;;  %v2432_v12 = vld [vmem:[#allocation5 + $0x50] ss:$8 sps:$4 sm:$0xff]   ;;  %v2433_v13 = vld [vmem:[#allocation5 + $0x64] ss:$8 sps:$4 sm:$0xff]  }
  0x3c   :  { %v2435_v14 = vld [vmem:[#allocation5 + $0x60] ss:$8 sps:$4 sm:$0xff]   ;;  %v2436_v15 = vld [vmem:[#allocation5 + $0x74] ss:$8 sps:$4 sm:$0xff]   ;;  %v2438_v16 = vld [vmem:[#allocation5 + $0x70] ss:$8 sps:$4 sm:$0xff]  }
  0x3d   :  { %v63_v17 = vld [vmem:[#allocation2] sm:$0xff]  ;;  %v64_v18 = vld [vmem:[#allocation2 + $0x8] sm:$0xff]  ;;  %v66_v21 = vld [vmem:[#allocation2 + $0x18] sm:$0xff] }
  0x3e   :  { %270 = vmatpush1.bf16.msra.mxu0 %v2420_v4  ;;  %2399 = vmatpush1.bf16.msra.mxu1 %v2420_v4  ;;  %v127_v19 = vpack.c.bf16 %v64_v18, %v63_v17  ;;  %v128_v22 = vpack.c.bf16 %v66_v21, %v65_v20  ;;  %v67_v23 = vld [vmem:[#allocation2 + $0x20] sm:$0xff]  ;;  %v68_v24 = vld [vmem:[#allocation2 + $0x28] sm:$0xff]  ;;  %v69_v26 = vld [vmem:[#allocation2 + $0x30] sm:$0xff] }
  0x3f   :  { %271 = vmatprep.subr.bf16.mxu0 %v2421_v5  ;;  %2392 = vmatprep.subr.bf16.mxu1 %v2421_v5  ;;  %v129_v25 = vpack.c.bf16 %v68_v24, %v67_v23  ;;  %v70_v27 = vld [vmem:[#allocation2 + $0x38] sm:$0xff]  ;;  %v111_v29 = vld [vmem:[#allocation2 + $0x180] sm:$0xff]  ;;  %v112_v30 = vld [vmem:[#allocation2 + $0x188] sm:$0xff] }
  0x40   :  { %v130_v28 = vpack.c.bf16 %v70_v27, %v69_v26  ;;  %v71_v31 = vld [vmem:[#allocation2 + $0x40] sm:$0xff]  ;;  %v72_v32 = vld [vmem:[#allocation2 + $0x48] sm:$0xff]  ;;  %v151_v33 = vpack.c.bf16 %v112_v30, %v111_v29  ;;  %v113_v35 = vld [vmem:[#allocation2 + $0x190] sm:$0xff] }
  0x41   :  { %v131_v34 = vpack.c.bf16 %v72_v32, %v71_v31  ;;  %v114_v36 = vld [vmem:[#allocation2 + $0x198] sm:$0xff]  ;;  %v73_v37 = vld [vmem:[#allocation2 + $0x50] sm:$0xff]  ;;  %v115_v41 = vld [vmem:[#allocation2 + $0x1a0] sm:$0xff] }
  0x42   :  { %272 = vmatpush1.bf16.msra.mxu0 %v2423_v6  ;;  %2400 = vmatpush1.bf16.msra.mxu1 %v2423_v6  ;;  %v74_v38 = vld [vmem:[#allocation2 + $0x58] sm:$0xff]  ;;  %v152_v39 = vpack.c.bf16 %v114_v36, %v113_v35  ;;  %v116_v42 = vld [vmem:[#allocation2 + $0x1a8] sm:$0xff]  ;;  %v75_v43 = vld [vmem:[#allocation2 + $0x60] sm:$0xff] }
  0x43   :  { %273 = vmatprep.subr.bf16.mxu0 %v2424_v7  ;;  %2393 = vmatprep.subr.bf16.mxu1 %v2424_v7  ;;  %v132_v40 = vpack.c.bf16 %v74_v38, %v73_v37  ;;  %v76_v44 = vld [vmem:[#allocation2 + $0x68] sm:$0xff]  ;;  %v153_v45 = vpack.c.bf16 %v116_v42, %v115_v41  ;;  %v117_v47 = vld [vmem:[#allocation2 + $0x1b0] sm:$0xff]  ;;  %v118_v48 = vld [vmem:[#allocation2 + $0x1b8] sm:$0xff] }
  0x44   :  { %v133_v46 = vpack.c.bf16 %v76_v44, %v75_v43  ;;  %v77_v49 = vld [vmem:[#allocation2 + $0x70] sm:$0xff]  ;;  %v78_v50 = vld [vmem:[#allocation2 + $0x78] sm:$0xff]  ;;  %v154_v51 = vpack.c.bf16 %v118_v48, %v117_v47  ;;  %v119_v53 = vld [vmem:[#allocation2 + $0x1c0] sm:$0xff] }
  0x45   :  { %v134_v52 = vpack.c.bf16 %v78_v50, %v77_v49  ;;  %v120_v54 = vld [vmem:[#allocation2 + $0x1c8] sm:$0xff]  ;;  %v2439_v55 = vld [vmem:[#allocation7] sm:$0xff]   ;;  %v121_v61 = vld [vmem:[#allocation2 + $0x1d0] sm:$0xff] }
  0x46   :  { %274 = vmatpush1.bf16.msra.mxu0 %v2426_v8  ;;  %2401 = vmatpush1.bf16.msra.mxu1 %v2426_v8  ;;  %v79_v56 = vld [vmem:[#allocation2 + $0x80] sm:$0xff]  ;;  %v80_v57 = vld [vmem:[#allocation2 + $0x88] sm:$0xff]  ;;  %v155_v58 = vpack.c.bf16 %v120_v54, %v119_v53  ;;  %v122_v62 = vld [vmem:[#allocation2 + $0x1d8] sm:$0xff] }
  0x47   :  { %275 = vmatprep.subr.bf16.mxu0 %v2427_v9  ;;  %2394 = vmatprep.subr.bf16.mxu1 %v2427_v9  ;;  %v2440_v59 = vld [vmem:[#allocation7 + $0x8] sm:$0xff]   ;;  %v135_v60 = vpack.c.bf16 %v80_v57, %v79_v56  ;;  %v2441_v63 = vld [vmem:[#allocation7 + $0x10] sm:$0xff]   ;;  %v156_v1 = vpack.c.bf16 %v122_v62, %v121_v61  ;;  %v82_v3 = vld [vmem:[#allocation2 + $0x98] sm:$0xff] }
  0x48   :  { %v81_v2 = vld [vmem:[#allocation2 + $0x90] sm:$0xff]  ;;  %v2442_v4 = vld [vmem:[#allocation7 + $0x18] sm:$0xff]   ;;  %v123_v6 = vld [vmem:[#allocation2 + $0x1e0] sm:$0xff] }
  0x49   :  { %v136_v5 = vpack.c.bf16 %v82_v3, %v81_v2  ;;  %v124_v7 = vld [vmem:[#allocation2 + $0x1e8] sm:$0xff]  ;;  %v83_v9 = vld [vmem:[#allocation2 + $0xa0] sm:$0xff]  ;;  %v126_v20 = vld [vmem:[#allocation2 + $0x1f8] sm:$0xff] }
  0x4a   :  { %276 = vmatpush1.bf16.msra.mxu0 %v2429_v10  ;;  %2402 = vmatpush1.bf16.msra.mxu1 %v2429_v10  ;;  %v157_v8 = vpack.c.bf16 %v124_v7, %v123_v6  ;;  %v84_v10 = vld [vmem:[#allocation2 + $0xa8] sm:$0xff]  ;;  %v2443_v18 = vld [vmem:[#allocation7 + $0x20] sm:$0xff]   ;;  %v2445_v27 = vld [vmem:[#allocation7 + $0x30] sm:$0xff]  }
  0x4b   :  { %277 = vmatprep.subr.bf16.mxu0 %v2430_v11  ;;  %2395 = vmatprep.subr.bf16.mxu1 %v2430_v11  ;;  %v177_v11 = vlaneseq  ;;  %v2444_v24 = vld [vmem:[#allocation7 + $0x28] sm:$0xff]   ;;  %v2446_v29 = vld [vmem:[#allocation7 + $0x38] sm:$0xff]   ;;  %v89_v30 = vld [vmem:[#allocation2 + $0xd0] sm:$0xff] }
  0x4c   :  { %v88_v26 = vld [vmem:[#allocation2 + $0xc8] sm:$0xff]  ;;  %v90_v31 = vld [vmem:[#allocation2 + $0xd8] sm:$0xff]  ;;  %v93_v36 = vld [vmem:[#allocation2 + $0xf0] sm:$0xff] }
  0x4d   :  { %v140_v32 = vpack.c.bf16 %v90_v31, %v89_v30  ;;  %v94_v37 = vld [vmem:[#allocation2 + $0xf8] sm:$0xff]  ;;  %v97_v42 = vld [vmem:[#allocation2 + $0x110] sm:$0xff]  ;;  %v107_v57 = vld [vmem:[#allocation2 + $0x160] sm:$0xff] }
  0x4e   :  { %278 = vmatpush1.bf16.msra.mxu0 %v2432_v12  ;;  %2403 = vmatpush1.bf16.msra.mxu1 %v2432_v12  ;;  %v137_v12 = vpack.c.bf16 %v84_v10, %v83_v9  ;;  %v142_v38 = vpack.c.bf16 %v94_v37, %v93_v36  ;;  %v98_v43 = vld [vmem:[#allocation2 + $0x118] sm:$0xff]  ;;  %v101_v48 = vld [vmem:[#allocation2 + $0x130] sm:$0xff] }
  0x4f   :  { %279 = vmatprep.subr.bf16.mxu0 %v2433_v13  ;;  %2396 = vmatprep.subr.bf16.mxu1 %v2433_v13  ;;  %v2902_v13 = vshrl.u32 %v177_v11, 7  ;;  %v144_v44 = vpack.c.bf16 %v98_v43, %v97_v42  ;;  %v102_v49 = vld [vmem:[#allocation2 + $0x138] sm:$0xff]  ;;  %v105_v54 = vld [vmem:[#allocation2 + $0x150] sm:$0xff] }
  0x50   :  { %v146_v50 = vpack.c.bf16 %v102_v49, %v101_v48  ;;  %v110_v61 = vld [vmem:[#allocation2 + $0x178] sm:$0xff] }
  0x51   :  { %v183_v17 = vsub.s32 1, %v2902_v13 }
  0x52   :  { %280 = vmatpush1.bf16.msra.mxu0 %v2435_v14  ;;  %2404 = vmatpush1.bf16.msra.mxu1 %v2435_v14  ;;  %v2907_v14 = vld [vmem:[%s3365_s2] sm:$0x3] }
  0x53   :  { %281 = vmatprep.subr.bf16.mxu0 %v2436_v15  ;;  %2397 = vmatprep.subr.bf16.mxu1 %v2436_v15  ;;  %v85_v15 = vld [vmem:[#allocation2 + $0xb0] sm:$0xff]  ;;  %v2912_v21 = vrot.slane %v2907_v14, %v183_v17 }
  0x56   :  { %282 = vmatpush1.bf16.msra.mxu0 %v2438_v16  ;;  %2405 = vmatpush1.bf16.msra.mxu1 %v2438_v16  ;;  %v86_v16 = vld [vmem:[#allocation2 + $0xb8] sm:$0xff] }
  0x57   :  { %2310 = vmatprep.subr.bf16.mxu1 %v2439_v55  ;;  %v138_v23 = vpack.c.bf16 %v86_v16, %v85_v15 }
  0x59   :  { %300 = vmatmul.mubr.bf16.vlgmr.msra.gmra.mrb[0].mxu0 %v127_v19  ;;  %540 = vmatmul.mubr.bf16.vlgmr.msra.gmra.mrb[0].mxu1 %v151_v33  ;;  %v125_v19 = vld [vmem:[#allocation2 + $0x1f0] sm:$0xff]  ;;  %v91_v33 = vld [vmem:[#allocation2 + $0xe0] sm:$0xff] }
  0x5a   :  { %309 = vmatprep.mubr.bf16.mxu0 %v2805_v0  ;;  %549 = vmatprep.mubr.bf16.mxu1 %v2805_v0 }
  0x5b   :  { %2311 = vmatpush3.bf16.msra.mxu1 %v2439_v55  ;;  %v106_v55 = vld [vmem:[#allocation2 + $0x158] sm:$0xff] }
  0x5c   :  { %2312 = vmatprep.subr.bf16.mxu1 %v2440_v59  ;;  %v148_v56 = vpack.c.bf16 %v106_v55, %v105_v54 }
  0x5f   :  { %2313 = vmatpush3.bf16.msra.mxu1 %v2440_v59 }
  0x60   :  { %2314 = vmatprep.subr.bf16.mxu1 %v2441_v63 }
  0x61   :  { %310 = vmatmul.mubr.bf16.gmra.mrb[4].mxu0 %v128_v22  ;;  %550 = vmatmul.mubr.bf16.gmra.mrb[4].mxu1 %v152_v39  ;;  %v158_v22 = vpack.c.bf16 %v126_v20, %v125_v19  ;;  %v95_v39 = vld [vmem:[#allocation2 + $0x100] sm:$0xff] }
  0x62   :  { %319 = vmatprep.mubr.bf16.mxu0 %v2805_v0  ;;  %559 = vmatprep.mubr.bf16.mxu1 %v2805_v0 }
  0x63   :  { %2315 = vmatpush3.bf16.msra.mxu1 %v2441_v63  ;;  %v179_v63 = vsub.s32 0, %v2902_v13 }
  0x64   :  { %2316 = vmatprep.subr.bf16.mxu1 %v2442_v4 }
  0x67   :  { %2317 = vmatpush3.bf16.msra.mxu1 %v2442_v4 }
  0x68   :  { %2318 = vmatprep.subr.bf16.mxu1 %v2443_v18 }
  0x69   :  { %320 = vmatmul.mubr.bf16.gmra.mrb[8].mxu0 %v129_v25  ;;  %560 = vmatmul.mubr.bf16.gmra.mrb[8].mxu1 %v153_v45  ;;  %v87_v25 = vld [vmem:[#allocation2 + $0xc0] sm:$0xff] }
  0x6a   :  { %329 = vmatprep.mubr.bf16.mxu0 %v2805_v0  ;;  %569 = vmatprep.mubr.bf16.mxu1 %v2805_v0  ;;  %v99_v45 = vld [vmem:[#allocation2 + $0x120] sm:$0xff] }
  0x6b   :  { %2319 = vmatpush3.bf16.msra.mxu1 %v2443_v18 }
  0x6c   :  { %2320 = vmatprep.subr.bf16.mxu1 %v2444_v24 }
  0x6f   :  { %2321 = vmatpush3.bf16.msra.mxu1 %v2444_v24 }
  0x70   :  { %2322 = vmatprep.subr.bf16.mxu1 %v2445_v27 }
  0x71   :  { %330 = vmatmul.mubr.bf16.gmra.mrb[12].mxu0 %v130_v28  ;;  %570 = vmatmul.mubr.bf16.gmra.mrb[12].mxu1 %v154_v51  ;;  %v139_v28 = vpack.c.bf16 %v88_v26, %v87_v25  ;;  %v103_v51 = vld [vmem:[#allocation2 + $0x140] sm:$0xff] }
  0x72   :  { %339 = vmatprep.mubr.bf16.mxu0 %v2805_v0  ;;  %579 = vmatprep.mubr.bf16.mxu1 %v2805_v0 }
  0x73   :  { %2323 = vmatpush3.bf16.msra.mxu1 %v2445_v27 }
  0x74   :  { %2324 = vmatprep.subr.bf16.mxu1 %v2446_v29 }
  0x77   :  { %2325 = vmatpush3.bf16.msra.mxu1 %v2446_v29 }
  0x79   :  { %340 = vmatmul.mubr.bf16.gmra.mrb[16].mxu0 %v131_v34  ;;  %580 = vmatmul.mubr.bf16.gmra.mrb[16].mxu1 %v155_v58  ;;  %v92_v34 = vld [vmem:[#allocation2 + $0xe8] sm:$0xff] }
  0x7a   :  { %349 = vmatprep.mubr.bf16.mxu0 %v2805_v0  ;;  %589 = vmatprep.mubr.bf16.mxu1 %v2805_v0  ;;  %v141_v35 = vpack.c.bf16 %v92_v34, %v91_v33  ;;  %v108_v58 = vld [vmem:[#allocation2 + $0x168] sm:$0xff] }
  0x7b   :  { %v149_v59 = vpack.c.bf16 %v108_v58, %v107_v57 }
  0x81   :  { %350 = vmatmul.mubr.bf16.gmra.mrb[20].mxu0 %v132_v40  ;;  %590 = vmatmul.mubr.bf16.gmra.mrb[20].mxu1 %v156_v1  ;;  %v96_v40 = vld [vmem:[#allocation2 + $0x108] sm:$0xff]  ;;  %v2928_v1 = vrot.slane %v2907_v14, %v179_v63 }
  0x82   :  { %359 = vmatprep.mubr.bf16.mxu0 %v2805_v0  ;;  %599 = vmatprep.mubr.bf16.mxu1 %v2805_v0  ;;  %v143_v41 = vpack.c.bf16 %v96_v40, %v95_v39 }
  0x89   :  { %360 = vmatmul.mubr.bf16.gmra.mrb[24].mxu0 %v133_v46  ;;  %600 = vmatmul.mubr.bf16.gmra.mrb[24].mxu1 %v157_v8  ;;  %v100_v46 = vld [vmem:[#allocation2 + $0x128] sm:$0xff] }
  0x8a   :  { %369 = vmatprep.mubr.bf16.mxu0 %v2805_v0  ;;  %609 = vmatprep.mubr.bf16.mxu1 %v2805_v0  ;;  %v145_v47 = vpack.c.bf16 %v100_v46, %v99_v45 }
  0x91   :  { %370 = vmatmul.mubr.bf16.gmra.mrb[28].mxu0 %v134_v52  ;;  %610 = vmatmul.mubr.bf16.gmra.mrb[28].mxu1 %v158_v22  ;;  %v104_v52 = vld [vmem:[#allocation2 + $0x148] sm:$0xff] }
  0x92   :  { %379 = vmatprep.mubr.bf16.mxu0 %v2805_v0  ;;  %v147_v53 = vpack.c.bf16 %v104_v52, %v103_v51 }
  0x99   :  { %380 = vmatmul.mubr.bf16.gmra.mrb[32].mxu0 %v135_v60  ;;  %v109_v60 = vld [vmem:[#allocation2 + $0x170] sm:$0xff] }
  0x9a   :  { %389 = vmatprep.mubr.bf16.mxu0 %v2805_v0  ;;  %v150_v62 = vpack.c.bf16 %v110_v61, %v109_v60 }
  0xa1   :  { %390 = vmatmul.mubr.bf16.gmra.mrb[36].mxu0 %v136_v5 }
  0xa2   :  { %399 = vmatprep.mubr.bf16.mxu0 %v2805_v0 }
  0xa9   :  { %400 = vmatmul.mubr.bf16.gmra.mrb[40].mxu0 %v137_v12 }
  0xaa   :  { %409 = vmatprep.mubr.bf16.mxu0 %v2805_v0 }
  0xb1   :  { %410 = vmatmul.mubr.bf16.gmra.mrb[44].mxu0 %v138_v23 }
  0xb2   :  { %419 = vmatprep.mubr.bf16.mxu0 %v2805_v0 }
  0xb9   :  { %420 = vmatmul.mubr.bf16.gmra.mrb[48].mxu0 %v139_v28 }
  0xba   :  { %429 = vmatprep.mubr.bf16.mxu0 %v2805_v0 }
  0xc1   :  { %430 = vmatmul.mubr.bf16.gmra.mrb[52].mxu0 %v140_v32 }
  0xc2   :  { %439 = vmatprep.mubr.bf16.mxu0 %v2805_v0 }
  0xc9   :  { %440 = vmatmul.mubr.bf16.gmra.mrb[56].mxu0 %v141_v35 }
  0xca   :  { %449 = vmatprep.mubr.bf16.mxu0 %v2805_v0 }
  0xd1   :  { %450 = vmatmul.mubr.bf16.gmra.mrb[60].mxu0 %v142_v38 }
  0xd2   :  { %459 = vmatprep.mubr.bf16.mxu0 %v2805_v0 }
  0xd9   :  { %460 = vmatmul.mubr.bf16.gmra.mrb[64].mxu0 %v143_v41 }
  0xda   :  { %469 = vmatprep.mubr.bf16.mxu0 %v2805_v0 }
  0xe1   :  { %470 = vmatmul.mubr.bf16.gmra.mrb[68].mxu0 %v144_v44 }
  0xe2   :  { %479 = vmatprep.mubr.bf16.mxu0 %v2805_v0 }
  0xe9   :  { %480 = vmatmul.mubr.bf16.gmra.mrb[72].mxu0 %v145_v47 }
  0xea   :  { %489 = vmatprep.mubr.bf16.mxu0 %v2805_v0 }
  0xf1   :  { %490 = vmatmul.mubr.bf16.gmra.mrb[76].mxu0 %v146_v50 }
  0xf2   :  { %499 = vmatprep.mubr.bf16.mxu0 %v2805_v0 }
  0xf9   :  { %500 = vmatmul.mubr.bf16.gmra.mrb[80].mxu0 %v147_v53 }
  0xfa   :  { %509 = vmatprep.mubr.bf16.mxu0 %v2805_v0 }
 0x101   :  { %510 = vmatmul.mubr.bf16.gmra.mrb[84].mxu0 %v148_v56 }
 0x102   :  { %519 = vmatprep.mubr.bf16.mxu0 %v2805_v0 }
 0x109   :  { %520 = vmatmul.mubr.bf16.gmra.mrb[88].mxu0 %v149_v59 }
 0x10a   :  { %529 = vmatprep.mubr.bf16.mxu0 %v2805_v0 }
 0x111   :  { %530 = vmatmul.mubr.bf16.gmra.mrb[92].mxu0 %v150_v62 }
 0x12c   :  { %v301_v2 = vpop.f32.mrb[0].mxu0  ;;  %v541_v37 = vpop.f32.mrb[0].mxu1 }
 0x12d   :  { %v302_v3 = vadd.f32 %v301_v2, %v2928_v1  ;;  %v2931_v4 = vpop.f32.mrb[1].mxu0  ;;  %v2954_v38 = vpop.f32.mrb[1].mxu1  ;;  %v542_v45 = vadd.f32 %v541_v37, %v2928_v1 }
 0x12e   :  { %v305_v5 = vpop.f32.mrb[2].mxu0  ;;  %3369 = vst [vmem:[#allocation12_spill] sm:$0xff] %v2954_v38  ;;  %v545_v40 = vpop.f32.mrb[2].mxu1 }
 0x12f   :  { %v306_v6 = vadd.f32 %v305_v5, %v2928_v1  ;;  %v2934_v7 = vpop.f32.mrb[3].mxu0  ;;  %v620_v0 = vmax.f32 %v302_v3, 0.0  ;;  %v2956_v42 = vpop.f32.mrb[3].mxu1  ;;  %v546_v47 = vadd.f32 %v545_v40, %v2928_v1  ;;  %v668_v50 = vmax.f32 %v542_v45, 0.0 }
 0x130   :  { %3370 = vst [vmem:[#allocation13_spill] sm:$0xff] %v2956_v42 }
 0x131   :  { %v621_v8 = vmax.f32 %v306_v6, 0.0  ;;  %v669_v53 = vmax.f32 %v546_v47, 0.0 }
 0x133   :  { %v1068_v9 = vpack.c.bf16 %v621_v8, %v620_v0  ;;  %v2968_v57 = vpack.c.bf16 %v669_v53, %v668_v50 }
 0x134   :  { %v311_v10 = vpop.f32.mrb[4].mxu0  ;;  %v551_v54 = vpop.f32.mrb[4].mxu1 }
 0x135   :  { %v312_v11 = vadd.f32 %v311_v10, %v2928_v1  ;;  %v2937_v12 = vpop.f32.mrb[5].mxu0  ;;  %2326 = vmatprep.mubr.bf16.mxu1 %v1068_v9  ;;  %v2966_v55 = vpop.f32.mrb[5].mxu1  ;;  %v552_v63 = vadd.f32 %v551_v54, %v2928_v1 }
 0x136   :  { %v315_v13 = vpop.f32.mrb[6].mxu0  ;;  %3371 = vst [vmem:[#allocation14_spill] sm:$0xff] %v2966_v55  ;;  %v555_v58 = vpop.f32.mrb[6].mxu1 }
 0x137   :  { %v316_v14 = vadd.f32 %v315_v13, %v2928_v1  ;;  %v2940_v15 = vpop.f32.mrb[7].mxu0  ;;  %v622_v16 = vmax.f32 %v312_v11, 0.0  ;;  %v2970_v60 = vpop.f32.mrb[7].mxu1  ;;  %v556_v3 = vadd.f32 %v555_v58, %v2928_v1  ;;  %v670_v0 = vmax.f32 %v552_v63, 0.0 }
 0x138   :  { %3372 = vst [vmem:[#allocation15_spill] sm:$0xff] %v2970_v60 }
 0x139   :  { %v623_v17 = vmax.f32 %v316_v14, 0.0  ;;  %v671_v10 = vmax.f32 %v556_v3, 0.0 }
 0x13b   :  { %v1069_v18 = vpack.c.bf16 %v623_v17, %v622_v16  ;;  %v2982_v16 = vpack.c.bf16 %v671_v10, %v670_v0 }
 0x13c   :  { %v321_v19 = vpop.f32.mrb[8].mxu0  ;;  %v561_v11 = vpop.f32.mrb[8].mxu1 }
 0x13d   :  { %v322_v20 = vadd.f32 %v321_v19, %v2928_v1  ;;  %v2943_v22 = vpop.f32.mrb[9].mxu0  ;;  %2327 = vmatmul.mubr.bf16.vlgmr.msra.gmra.mrb[32].mxu1 %v1069_v18  ;;  %v2980_v13 = vpop.f32.mrb[9].mxu1 }
 0x13e   :  { %v325_v23 = vpop.f32.mrb[10].mxu0  ;;  %3373 = vst [vmem:[#allocation16_spill] sm:$0xff] %v2980_v13  ;;  %v565_v17 = vpop.f32.mrb[10].mxu1 }
 0x13f   :  { %v326_v24 = vadd.f32 %v325_v23, %v2928_v1  ;;  %v2946_v25 = vpop.f32.mrb[11].mxu0  ;;  %v624_v26 = vmax.f32 %v322_v20, 0.0  ;;  %v2984_v19 = vpop.f32.mrb[11].mxu1 }
 0x140   :  { %3374 = vst [vmem:[#allocation17_spill] sm:$0xff] %v2984_v19 }
 0x141   :  { %v625_v27 = vmax.f32 %v326_v24, 0.0  ;;  %v562_v24 = vadd.f32 %v561_v11, %v2928_v1 }
 0x143   :  { %v1070_v28 = vpack.c.bf16 %v625_v27, %v624_v26  ;;  %v566_v27 = vadd.f32 %v565_v17, %v2928_v1 }
 0x144   :  { %v331_v29 = vpop.f32.mrb[12].mxu0 }
 0x145   :  { %v332_v30 = vadd.f32 %v331_v29, %v2928_v1  ;;  %v2949_v31 = vpop.f32.mrb[13].mxu0  ;;  %2330 = vmatprep.mubr.bf16.mxu1 %v1070_v28 }
 0x146   :  { %v335_v32 = vpop.f32.mrb[14].mxu0 }
 0x147   :  { %v336_v33 = vadd.f32 %v335_v32, %v2928_v1  ;;  %v2952_v34 = vpop.f32.mrb[15].mxu0  ;;  %v626_v35 = vmax.f32 %v332_v30, 0.0 }
 0x149   :  { %v627_v36 = vmax.f32 %v336_v33, 0.0  ;;  %v672_v33 = vmax.f32 %v562_v24, 0.0 }
 0x14b   :  { %v1071_v39 = vpack.c.bf16 %v627_v36, %v626_v35  ;;  %v571_v35 = vpop.f32.mrb[12].mxu1  ;;  %v673_v36 = vmax.f32 %v566_v27, 0.0 }
 0x14c   :  { %v341_v41 = vpop.f32.mrb[16].mxu0  ;;  %v2994_v37 = vpop.f32.mrb[13].mxu1  ;;  %v572_v50 = vadd.f32 %v571_v35, %v2928_v1 }
 0x14d   :  { %v342_v43 = vadd.f32 %v341_v41, %v2928_v1  ;;  %v2959_v44 = vpop.f32.mrb[17].mxu0  ;;  %2331 = vmatmul.mubr.bf16.gmra.mrb[36].mxu1 %v1071_v39  ;;  %3375 = vst [vmem:[#allocation18_spill] sm:$0xff] %v2994_v37  ;;  %v575_v40 = vpop.f32.mrb[14].mxu1 }
 0x14e   :  { %v345_v46 = vpop.f32.mrb[18].mxu0  ;;  %v2998_v45 = vpop.f32.mrb[15].mxu1  ;;  %v674_v58 = vmax.f32 %v572_v50, 0.0 }
 0x14f   :  { %v346_v48 = vadd.f32 %v345_v46, %v2928_v1  ;;  %v2964_v49 = vpop.f32.mrb[19].mxu0  ;;  %v628_v51 = vmax.f32 %v342_v43, 0.0  ;;  %v2996_v43 = vpack.c.bf16 %v673_v36, %v672_v33  ;;  %3376 = vst [vmem:[#allocation19_spill] sm:$0xff] %v2998_v45 }
 0x151   :  { %v629_v52 = vmax.f32 %v346_v48, 0.0 }
 0x153   :  { %v1072_v56 = vpack.c.bf16 %v629_v52, %v628_v51 }
 0x154   :  { %v351_v59 = vpop.f32.mrb[20].mxu0 }
 0x155   :  { %v352_v61 = vadd.f32 %v351_v59, %v2928_v1  ;;  %v2973_v62 = vpop.f32.mrb[21].mxu0  ;;  %2334 = vmatprep.mubr.bf16.mxu1 %v1072_v56  ;;  %v581_v56 = vpop.f32.mrb[16].mxu1  ;;  %v576_v59 = vadd.f32 %v575_v40, %v2928_v1 }
 0x156   :  { %v355_v2 = vpop.f32.mrb[22].mxu0 }
 0x157   :  { %v356_v5 = vadd.f32 %v355_v2, %v2928_v1  ;;  %v2978_v6 = vpop.f32.mrb[23].mxu0  ;;  %v630_v8 = vmax.f32 %v352_v61, 0.0  ;;  %v3008_v61 = vpop.f32.mrb[17].mxu1 }
 0x158   :  { %3377 = vst [vmem:[#allocation20_spill] sm:$0xff] %v3008_v61  ;;  %v585_v2 = vpop.f32.mrb[18].mxu1 }
 0x159   :  { %v631_v9 = vmax.f32 %v356_v5, 0.0  ;;  %v675_v5 = vmax.f32 %v576_v59, 0.0  ;;  %v3010_v0 = vpop.f32.mrb[19].mxu1 }
 0x15a   :  { %3378 = vst [vmem:[#allocation21_spill] sm:$0xff] %v3010_v0 }
 0x15b   :  { %v1073_v14 = vpack.c.bf16 %v631_v9, %v630_v8  ;;  %v3015_v11 = vpack.c.bf16 %v675_v5, %v674_v58 }
 0x15c   :  { %v361_v18 = vpop.f32.mrb[24].mxu0 }
 0x15d   :  { %v362_v20 = vadd.f32 %v361_v18, %v2928_v1  ;;  %v2987_v23 = vpop.f32.mrb[25].mxu0  ;;  %2335 = vmatmul.mubr.bf16.gmra.mrb[40].mxu1 %v1073_v14  ;;  %v582_v14 = vadd.f32 %v581_v56, %v2928_v1 }
 0x15e   :  { %v365_v26 = vpop.f32.mrb[26].mxu0 }
 0x15f   :  { %v366_v28 = vadd.f32 %v365_v26, %v2928_v1  ;;  %v2992_v29 = vpop.f32.mrb[27].mxu0  ;;  %v632_v30 = vmax.f32 %v362_v20, 0.0  ;;  %v591_v26 = vpop.f32.mrb[20].mxu1  ;;  %v676_v27 = vmax.f32 %v582_v14, 0.0 }
 0x160   :  { %v592_v50 = vadd.f32 %v591_v26, %v2928_v1 }
 0x161   :  { %v633_v32 = vmax.f32 %v366_v28, 0.0  ;;  %v586_v28 = vadd.f32 %v585_v2, %v2928_v1 }
 0x162   :  { %v678_v59 = vmax.f32 %v592_v50, 0.0 }
 0x163   :  { %v1074_v39 = vpack.c.bf16 %v633_v32, %v632_v30  ;;  %v3022_v30 = vpop.f32.mrb[21].mxu1  ;;  %v677_v36 = vmax.f32 %v586_v28, 0.0 }
 0x164   :  { %v371_v41 = vpop.f32.mrb[28].mxu0  ;;  %3379 = vst [vmem:[#allocation22_spill] sm:$0xff] %v3022_v30  ;;  %v595_v33 = vpop.f32.mrb[22].mxu1 }
 0x165   :  { %v372_v46 = vadd.f32 %v371_v41, %v2928_v1  ;;  %v3001_v47 = vpop.f32.mrb[29].mxu0  ;;  %2338 = vmatprep.mubr.bf16.mxu1 %v1074_v39  ;;  %v3024_v39 = vpop.f32.mrb[23].mxu1 }
 0x166   :  { %v375_v48 = vpop.f32.mrb[30].mxu0  ;;  %3380 = vst [vmem:[#allocation23_spill] sm:$0xff] %v3024_v39  ;;  %v601_v58 = vpop.f32.mrb[24].mxu1 }
 0x167   :  { %v376_v51 = vadd.f32 %v375_v48, %v2928_v1  ;;  %v3005_v52 = vpop.f32.mrb[31].mxu0  ;;  %v634_v53 = vmax.f32 %v372_v46, 0.0  ;;  %v3029_v48 = vpack.c.bf16 %v677_v36, %v676_v27  ;;  %v3036_v2 = vpop.f32.mrb[25].mxu1  ;;  %v602_v5 = vadd.f32 %v601_v58, %v2928_v1 }
 0x168   :  { %3381 = vst [vmem:[#allocation24_spill] sm:$0xff] %v3036_v2 }
 0x169   :  { %v635_v54 = vmax.f32 %v376_v51, 0.0 }
 0x16b   :  { %v1075_v63 = vpack.c.bf16 %v635_v54, %v634_v53 }
 0x16c   :  { %v381_v3 = vpop.f32.mrb[32].mxu0 }
 0x16d   :  { %v382_v8 = vadd.f32 %v381_v3, %v2928_v1  ;;  %v3013_v9 = vpop.f32.mrb[33].mxu0  ;;  %2339 = vmatmul.mubr.bf16.gmra.mrb[44].mxu1 %v1075_v63  ;;  %v596_v63 = vadd.f32 %v595_v33, %v2928_v1 }
 0x16e   :  { %v385_v10 = vpop.f32.mrb[34].mxu0 }
 0x16f   :  { %v386_v17 = vadd.f32 %v385_v10, %v2928_v1  ;;  %v3019_v18 = vpop.f32.mrb[35].mxu0  ;;  %v636_v20 = vmax.f32 %v382_v8, 0.0  ;;  %v605_v8 = vpop.f32.mrb[26].mxu1  ;;  %v679_v14 = vmax.f32 %v596_v63, 0.0 }
 0x170   :  { %v606_v26 = vadd.f32 %v605_v8, %v2928_v1 }
 0x171   :  { %v637_v24 = vmax.f32 %v386_v17, 0.0  ;;  %v3039_v17 = vpop.f32.mrb[27].mxu1  ;;  %v3045_v28 = vpack.c.bf16 %v679_v14, %v678_v59 }
 0x172   :  { %3382 = vst [vmem:[#allocation25_spill] sm:$0xff] %v3039_v17  ;;  %v611_v50 = vpop.f32.mrb[28].mxu1 }
 0x173   :  { %v1076_v32 = vpack.c.bf16 %v637_v24, %v636_v20 }
 0x174   :  { %v391_v35 = vpop.f32.mrb[36].mxu0 }
 0x175   :  { %v392_v40 = vadd.f32 %v391_v35, %v2928_v1  ;;  %v3027_v41 = vpop.f32.mrb[37].mxu0  ;;  %2342 = vmatprep.mubr.bf16.mxu1 %v1076_v32  ;;  %v680_v35 = vmax.f32 %v602_v5, 0.0 }
 0x176   :  { %v395_v46 = vpop.f32.mrb[38].mxu0 }
 0x177   :  { %v396_v51 = vadd.f32 %v395_v46, %v2928_v1  ;;  %v3033_v53 = vpop.f32.mrb[39].mxu0  ;;  %v638_v54 = vmax.f32 %v392_v40, 0.0  ;;  %v681_v46 = vmax.f32 %v606_v26, 0.0 }
 0x179   :  { %v639_v56 = vmax.f32 %v396_v51, 0.0  ;;  %v612_v51 = vadd.f32 %v611_v50, %v2928_v1  ;;  %v3053_v58 = vpack.c.bf16 %v681_v46, %v680_v35 }
 0x17b   :  { %v1077_v3 = vpack.c.bf16 %v639_v56, %v638_v54  ;;  %v3051_v54 = vpop.f32.mrb[29].mxu1 }
 0x17c   :  { %v401_v10 = vpop.f32.mrb[40].mxu0  ;;  %3383 = vst [vmem:[#allocation26_spill] sm:$0xff] %v3051_v54  ;;  %v615_v63 = vpop.f32.mrb[30].mxu1 }
 0x17d   :  { %v402_v20 = vadd.f32 %v401_v10, %v2928_v1  ;;  %v3042_v24 = vpop.f32.mrb[41].mxu0  ;;  %2343 = vmatmul.mubr.bf16.gmra.mrb[48].mxu1 %v1077_v3  ;;  %v3055_v59 = vpop.f32.mrb[31].mxu1  ;;  %v616_v5 = vadd.f32 %v615_v63, %v2928_v1 }
 0x17e   :  { %v405_v27 = vpop.f32.mrb[42].mxu0  ;;  %3384 = vst [vmem:[#allocation27_spill] sm:$0xff] %v3055_v59 }
 0x17f   :  { %v406_v32 = vadd.f32 %v405_v27, %v2928_v1  ;;  %v3048_v33 = vpop.f32.mrb[43].mxu0  ;;  %v640_v36 = vmax.f32 %v402_v20, 0.0  ;;  %v682_v20 = vmax.f32 %v612_v51, 0.0 }
 0x181   :  { %v641_v40 = vmax.f32 %v406_v32, 0.0  ;;  %v683_v32 = vmax.f32 %v616_v5, 0.0 }
 0x183   :  { %v1078_v56 = vpack.c.bf16 %v641_v40, %v640_v36  ;;  %v3064_v40 = vpack.c.bf16 %v683_v32, %v682_v20 }
 0x184   :  { %v411_v3 = vpop.f32.mrb[44].mxu0 }
 0x185   :  { %v412_v8 = vadd.f32 %v411_v3, %v2928_v1  ;;  %v3058_v10 = vpop.f32.mrb[45].mxu0  ;;  %2346 = vmatprep.mubr.bf16.mxu1 %v1078_v56 }
 0x186   :  { %v415_v14 = vpop.f32.mrb[46].mxu0 }
 0x187   :  { %v416_v26 = vadd.f32 %v415_v14, %v2928_v1  ;;  %v3062_v27 = vpop.f32.mrb[47].mxu0  ;;  %v642_v35 = vmax.f32 %v412_v8, 0.0 }
 0x189   :  { %v643_v36 = vmax.f32 %v416_v26, 0.0 }
 0x18b   :  { %v1079_v46 = vpack.c.bf16 %v643_v36, %v642_v35 }
 0x18c   :  { %v421_v50 = vpop.f32.mrb[48].mxu0 }
 0x18d   :  { %v422_v3 = vadd.f32 %v421_v50, %v2928_v1  ;;  %v3067_v17 = vpop.f32.mrb[49].mxu0  ;;  %2347 = vmatmul.mubr.bf16.gmra.mrb[52].mxu1 %v1079_v46 }
 0x18e   :  { %v425_v56 = vpop.f32.mrb[50].mxu0 }
 0x18f   :  { %v426_v63 = vadd.f32 %v425_v56, %v2928_v1  ;;  %v3070_v51 = vpop.f32.mrb[51].mxu0  ;;  %v644_v14 = vmax.f32 %v422_v3, 0.0 }
 0x191   :  { %v645_v59 = vmax.f32 %v426_v63, 0.0 }
 0x193   :  { %v1080_v2 = vpack.c.bf16 %v645_v59, %v644_v14 }
 0x194   :  { %v431_v5 = vpop.f32.mrb[52].mxu0 }
 0x195   :  { %v432_v8 = vadd.f32 %v431_v5, %v2928_v1  ;;  %v3073_v20 = vpop.f32.mrb[53].mxu0  ;;  %2350 = vmatprep.mubr.bf16.mxu1 %v1080_v2 }
 0x196   :  { %v435_v26 = vpop.f32.mrb[54].mxu0 }
 0x197   :  { %v436_v32 = vadd.f32 %v435_v26, %v2928_v1  ;;  %v3076_v35 = vpop.f32.mrb[55].mxu0  ;;  %v646_v36 = vmax.f32 %v432_v8, 0.0 }
 0x199   :  { %v647_v46 = vmax.f32 %v436_v32, 0.0 }
 0x19b   :  { %v1081_v50 = vpack.c.bf16 %v647_v46, %v646_v36 }
 0x19c   :  { %v441_v56 = vpop.f32.mrb[56].mxu0 }
 0x19d   :  { %v442_v54 = vadd.f32 %v441_v56, %v2928_v1  ;;  %v3079_v3 = vpop.f32.mrb[57].mxu0  ;;  %2351 = vmatmul.mubr.bf16.gmra.mrb[56].mxu1 %v1081_v50 }
 0x19e   :  { %v445_v59 = vpop.f32.mrb[58].mxu0 }
 0x19f   :  { %v446_v63 = vadd.f32 %v445_v59, %v2928_v1  ;;  %v3082_v14 = vpop.f32.mrb[59].mxu0  ;;  %v648_v2 = vmax.f32 %v442_v54, 0.0 }
 0x1a1   :  { %v649_v5 = vmax.f32 %v446_v63, 0.0 }
 0x1a3   :  { %v1082_v0 = vpack.c.bf16 %v649_v5, %v648_v2 }
 0x1a4   :  { %v451_v26 = vpop.f32.mrb[60].mxu0 }
 0x1a5   :  { %v452_v39 = vadd.f32 %v451_v26, %v2928_v1  ;;  %v3085_v8 = vpop.f32.mrb[61].mxu0  ;;  %2354 = vmatprep.mubr.bf16.mxu1 %v1082_v0 }
 0x1a6   :  { %v455_v32 = vpop.f32.mrb[62].mxu0 }
 0x1a7   :  { %v456_v36 = vadd.f32 %v455_v32, %v2928_v1  ;;  %v3088_v46 = vpop.f32.mrb[63].mxu0  ;;  %v650_v50 = vmax.f32 %v452_v39, 0.0 }
 0x1a9   :  { %v651_v56 = vmax.f32 %v456_v36, 0.0 }
 0x1ab   :  { %v1083_v61 = vpack.c.bf16 %v651_v56, %v650_v50 }
 0x1ac   :  { %v461_v59 = vpop.f32.mrb[64].mxu0 }
 0x1ad   :  { %v462_v30 = vadd.f32 %v461_v59, %v2928_v1  ;;  %v3091_v54 = vpop.f32.mrb[65].mxu0  ;;  %2355 = vmatmul.mubr.bf16.gmra.mrb[60].mxu1 %v1083_v61 }
 0x1ae   :  { %v465_v63 = vpop.f32.mrb[66].mxu0 }
 0x1af   :  { %v466_v2 = vadd.f32 %v465_v63, %v2928_v1  ;;  %v3094_v5 = vpop.f32.mrb[67].mxu0  ;;  %v652_v0 = vmax.f32 %v462_v30, 0.0 }
 0x1b1   :  { %v653_v26 = vmax.f32 %v466_v2, 0.0 }
 0x1b3   :  { %v1084_v19 = vpack.c.bf16 %v653_v26, %v652_v0 }
 0x1b4   :  { %v471_v32 = vpop.f32.mrb[68].mxu0 }
 0x1b5   :  { %v472_v45 = vadd.f32 %v471_v32, %v2928_v1  ;;  %v3097_v39 = vpop.f32.mrb[69].mxu0  ;;  %2358 = vmatprep.mubr.bf16.mxu1 %v1084_v19 }
 0x1b6   :  { %v475_v36 = vpop.f32.mrb[70].mxu0 }
 0x1b7   :  { %v476_v50 = vadd.f32 %v475_v36, %v2928_v1  ;;  %v3100_v56 = vpop.f32.mrb[71].mxu0  ;;  %v654_v61 = vmax.f32 %v472_v45, 0.0 }
 0x1b9   :  { %v655_v59 = vmax.f32 %v476_v50, 0.0 }
 0x1bb   :  { %v1085_v37 = vpack.c.bf16 %v655_v59, %v654_v61 }
 0x1bc   :  { %v481_v63 = vpop.f32.mrb[72].mxu0 }
 0x1bd   :  { %v482_v13 = vadd.f32 %v481_v63, %v2928_v1  ;;  %v3103_v30 = vpop.f32.mrb[73].mxu0  ;;  %2359 = vmatmul.mubr.bf16.gmra.mrb[64].mxu1 %v1085_v37 }
 0x1be   :  { %v485_v2 = vpop.f32.mrb[74].mxu0 }
 0x1bf   :  { %v486_v0 = vadd.f32 %v485_v2, %v2928_v1  ;;  %v3106_v26 = vpop.f32.mrb[75].mxu0  ;;  %v656_v19 = vmax.f32 %v482_v13, 0.0 }
 0x1c1   :  { %v657_v32 = vmax.f32 %v486_v0, 0.0 }
 0x1c3   :  { %v1086_v42 = vpack.c.bf16 %v657_v32, %v656_v19 }
 0x1c4   :  { %v491_v36 = vpop.f32.mrb[76].mxu0 }
 0x1c5   :  { %v492_v60 = vadd.f32 %v491_v36, %v2928_v1  ;;  %v3109_v45 = vpop.f32.mrb[77].mxu0  ;;  %2362 = vmatprep.mubr.bf16.mxu1 %v1086_v42 }
 0x1c6   :  { %3385 = vst [vmem:[#allocation28_spill] sm:$0xff] %v3109_v45  ;;  %v495_v50 = vpop.f32.mrb[78].mxu0 }
 0x1c7   :  { %v496_v61 = vadd.f32 %v495_v50, %v2928_v1  ;;  %v3112_v59 = vpop.f32.mrb[79].mxu0  ;;  %v658_v37 = vmax.f32 %v492_v60, 0.0 }
 0x1c8   :  { %3386 = vst [vmem:[#allocation29_spill] sm:$0xff] %v3112_v59 }
 0x1c9   :  { %v659_v63 = vmax.f32 %v496_v61, 0.0 }
 0x1cb   :  { %v1087_v55 = vpack.c.bf16 %v659_v63, %v658_v37 }
 0x1cc   :  { %v501_v2 = vpop.f32.mrb[80].mxu0 }
 0x1cd   :  { %v502_v38 = vadd.f32 %v501_v2, %v2928_v1  ;;  %v3115_v13 = vpop.f32.mrb[81].mxu0  ;;  %2363 = vmatmul.mubr.bf16.gmra.mrb[68].mxu1 %v1087_v55 }
 0x1ce   :  { %3387 = vst [vmem:[#allocation30_spill] sm:$0xff] %v3115_v13  ;;  %v505_v0 = vpop.f32.mrb[82].mxu0 }
 0x1cf   :  { %v506_v19 = vadd.f32 %v505_v0, %v2928_v1  ;;  %v3118_v32 = vpop.f32.mrb[83].mxu0  ;;  %v660_v42 = vmax.f32 %v502_v38, 0.0 }
 0x1d0   :  { %3388 = vst [vmem:[#allocation31_spill] sm:$0xff] %v3118_v32 }
 0x1d1   :  { %v661_v36 = vmax.f32 %v506_v19, 0.0 }
 0x1d3   :  { %v1088_v45 = vpack.c.bf16 %v661_v36, %v660_v42 }
 0x1d4   :  { %v511_v50 = vpop.f32.mrb[84].mxu0 }
 0x1d5   :  { %v512_v59 = vadd.f32 %v511_v50, %v2928_v1  ;;  %v3121_v60 = vpop.f32.mrb[85].mxu0  ;;  %2366 = vmatprep.mubr.bf16.mxu1 %v1088_v45 }
 0x1d6   :  { %3389 = vst [vmem:[#allocation32_spill] sm:$0xff] %v3121_v60  ;;  %v515_v61 = vpop.f32.mrb[86].mxu0 }
 0x1d7   :  { %v516_v37 = vadd.f32 %v515_v61, %v2928_v1  ;;  %v3124_v63 = vpop.f32.mrb[87].mxu0  ;;  %v662_v55 = vmax.f32 %v512_v59, 0.0 }
 0x1d8   :  { %3390 = vst [vmem:[#allocation33_spill] sm:$0xff] %v3124_v63 }
 0x1d9   :  { %v663_v2 = vmax.f32 %v516_v37, 0.0 }
 0x1db   :  { %v1089_v13 = vpack.c.bf16 %v663_v2, %v662_v55 }
 0x1dc   :  { %v521_v0 = vpop.f32.mrb[88].mxu0 }
 0x1dd   :  { %v522_v32 = vadd.f32 %v521_v0, %v2928_v1  ;;  %v3127_v38 = vpop.f32.mrb[89].mxu0  ;;  %2367 = vmatmul.mubr.bf16.gmra.mrb[72].mxu1 %v1089_v13 }
 0x1de   :  { %3391 = vst [vmem:[#allocation34_spill] sm:$0xff] %v3127_v38  ;;  %v525_v19 = vpop.f32.mrb[90].mxu0 }
 0x1df   :  { %v526_v42 = vadd.f32 %v525_v19, %v2928_v1  ;;  %v3130_v36 = vpop.f32.mrb[91].mxu0  ;;  %v664_v45 = vmax.f32 %v522_v32, 0.0  ;;  %v304_v19 = vadd.f32 %v2931_v4, %v2912_v21  ;;  %v314_v32 = vadd.f32 %v2937_v12, %v2912_v21 }
 0x1e0   :  { %v324_v4 = vadd.f32 %v2943_v22, %v2912_v21 }
 0x1e1   :  { %v665_v50 = vmax.f32 %v526_v42, 0.0  ;;  %v1878_v42 = vmul.f32 -1.442695, %v304_v19  ;;  %v354_v19 = vadd.f32 %v2973_v62, %v2912_v21 }
 0x1e3   :  { %v1090_v60 = vpack.c.bf16 %v665_v50, %v664_v45  ;;  %v1880_v45 = vmul.f32 -1.442695, %v314_v32  ;;  %2447 = vpow2.f32 %v1878_v42 }
 0x1e4   :  { %v531_v61 = vpop.f32.mrb[92].mxu0 }
 0x1e5   :  { %v532_v63 = vadd.f32 %v531_v61, %v2928_v1  ;;  %v3133_v59 = vpop.f32.mrb[93].mxu0  ;;  %2370 = vmatprep.mubr.bf16.mxu1 %v1090_v60  ;;  %v318_v60 = vadd.f32 %v2940_v15, %v2912_v21  ;;  %2449 = vpow2.f32 %v1880_v45  ;;  %v334_v15 = vadd.f32 %v2949_v31, %v2912_v21 }
 0x1e6   :  { %v535_v37 = vpop.f32.mrb[94].mxu0 }
 0x1e7   :  { %v536_v55 = vadd.f32 %v535_v37, %v2928_v1  ;;  %v3136_v2 = vpop.f32.mrb[95].mxu0  ;;  %v666_v13 = vmax.f32 %v532_v63, 0.0  ;;  %v308_v1 = vadd.f32 %v2934_v7, %v2912_v21  ;;  %v1881_v63 = vmul.f32 -1.442695, %v318_v60 }
 0x1e8   :  { %v328_v7 = vadd.f32 %v2946_v25, %v2912_v21  ;;  %v1884_v22 = vmul.f32 -1.442695, %v334_v15  ;;  %v1888_v15 = vmul.f32 -1.442695, %v354_v19 }
 0x1e9   :  { %v667_v0 = vmax.f32 %v536_v55, 0.0  ;;  %v1879_v50 = vmul.f32 -1.442695, %v308_v1  ;;  %2451 = vpow2.f32 %v1881_v63 }
 0x1ea   :  { %v1883_v61 = vmul.f32 -1.442695, %v328_v7 }
 0x1eb   :  { %v1091_v38 = vpack.c.bf16 %v667_v0, %v666_v13  ;;  %2453 = vpow2.f32 %v1879_v50  ;;  %v348_v0 = vadd.f32 %v2964_v49, %v2912_v21 }
 0x1ed   :  { %2371 = vmatmul.mubr.bf16.gmra.mrb[76].mxu1 %v1091_v38  ;;  %v2448_v12 = vpop.eup %2447  ;;  %v338_v38 = vadd.f32 %v2952_v34, %v2912_v21  ;;  %v344_v34 = vadd.f32 %v2959_v44, %v2912_v21  ;;  %v1887_v50 = vmul.f32 -1.442695, %v348_v0 }
 0x1ee   :  { %2374 = vmatprep.mubr.bf16.mxu1 %v2968_v57  ;;  %v1882_v57 = vmul.f32 -1.442695, %v324_v4 }
 0x1ef   :  { %v1885_v13 = vmul.f32 -1.442695, %v338_v38  ;;  %v1886_v42 = vmul.f32 -1.442695, %v344_v34 }
 0x1f0   :  { %2455 = vpow2.f32 %v1882_v57 }
 0x1f5   :  { %2375 = vmatmul.mubr.bf16.gmra.mrb[80].mxu1 %v2982_v16  ;;  %v2450_v16 = vpop.eup %2449 }
 0x1f6   :  { %2378 = vmatprep.mubr.bf16.mxu1 %v2996_v43  ;;  %v876_v43 = vadd.f32 1.0, %v2448_v12  ;;  %v2452_v37 = vpop.eup %2451 }
 0x1f7   :  { %v2454_v55 = vpop.eup %2453  ;;  %v879_v25 = vadd.f32 1.0, %v2452_v37 }
 0x1f8   :  { %2457 = vrcp.f32 %v876_v43  ;;  %v877_v31 = vadd.f32 1.0, %v2454_v55 }
 0x1f9   :  { %2459 = vpow2.f32 %v1883_v61 }
 0x1fa   :  { %2461 = vpow2.f32 %v1884_v22 }
 0x1fd   :  { %2379 = vmatmul.mubr.bf16.gmra.mrb[84].mxu1 %v3015_v11  ;;  %v878_v11 = vadd.f32 1.0, %v2450_v16 }
 0x1fe   :  { %2382 = vmatprep.mubr.bf16.mxu1 %v3029_v48  ;;  %v2456_v48 = vpop.eup %2455 }
 0x1ff   :  { %2463 = vrcp.f32 %v878_v11  ;;  %v880_v44 = vadd.f32 1.0, %v2456_v48  ;;  %v364_v48 = vadd.f32 %v2987_v23, %v2912_v21 }
 0x200   :  { %2465 = vpow2.f32 %v1885_v13 }
 0x201   :  { %2467 = vrcp.f32 %v879_v25 }
 0x202   :  { %2469 = vrcp.f32 %v877_v31 }
 0x203   :  { %2471 = vpow2.f32 %v1886_v42 }
 0x204   :  { %2473 = vrcp.f32 %v880_v44 }
 0x205   :  { %2383 = vmatmul.mubr.bf16.gmra.mrb[88].mxu1 %v3045_v28  ;;  %v3169_v28 = vld [vmem:[%s3367_s4] ss:$0 sm:$0xff]  ;;  %2475 = vpow2.f32 %v1887_v50 }
 0x206   :  { %2386 = vmatprep.mubr.bf16.mxu1 %v3053_v58  ;;  %v2458_v58 = vpop.eup %2457  ;;  %2477 = vpow2.f32 %v1888_v15 }
 0x207   :  { %v2460_v32 = vpop.eup %2459 }
 0x208   :  { %v2462_v1 = vpop.eup %2461  ;;  %v881_v25 = vadd.f32 1.0, %v2460_v32  ;;  %v374_v32 = vadd.f32 %v3001_v47, %v2912_v21 }
 0x209   :  { %v2464_v63 = vpop.eup %2463  ;;  %v882_v38 = vadd.f32 1.0, %v2462_v1 }
 0x20a   :  { %v2466_v7 = vpop.eup %2465 }
 0x20b   :  { %v2468_v43 = vpop.eup %2467  ;;  %v883_v11 = vadd.f32 1.0, %v2466_v7  ;;  %2479 = vrcp.f32 %v882_v38  ;;  %v1892_v7 = vmul.f32 -1.442695, %v374_v32 }
 0x20c   :  { %v2470_v37 = vpop.eup %2469 }
 0x20d   :  { %2387 = vmatmul.mubr.bf16.gmra.mrb[92].mxu1 %v3064_v40  ;;  %v358_v40 = vadd.f32 %v2978_v6, %v2912_v21  ;;  %v2472_v0 = vpop.eup %2471 }
 0x20e   :  { %v2474_v19 = vpop.eup %2473 }
 0x20f   :  { %v1889_v22 = vmul.f32 -1.442695, %v358_v40  ;;  %v2476_v42 = vpop.eup %2475  ;;  %v884_v40 = vadd.f32 1.0, %v2472_v0  ;;  %v394_v0 = vadd.f32 %v3027_v41, %v2912_v21 }
 0x210   :  { %v2328_v60 = vpop.f32.mrb[32].mxu1  ;;  %v2478_v44 = vpop.eup %2477 }
 0x211   :  { %v1214_v45 = vadd.f32 %v2328_v60, %v3169_v28  ;;  %v1205_v49 = vpop.f32.mrb[33].mxu1  ;;  %2481 = vpow2.f32 %v1889_v22  ;;  %v1890_v60 = vmul.f32 -1.442695, %v364_v48 }
 0x212   :  { %v1206_v4 = vadd.f32 %v3169_v28, %v1205_v49  ;;  %v2329_v12 = vpop.f32.mrb[34].mxu1  ;;  %2483 = vrcp.f32 %v883_v11 }
 0x213   :  { %v1462_v57 = vmul.f32 %v2464_v63, %v1214_v45  ;;  %v1217_v62 = vadd.f32 %v2329_v12, %v3169_v28  ;;  %v1208_v16 = vpop.f32.mrb[35].mxu1  ;;  %2485 = vrcp.f32 %v881_v25  ;;  %v378_v45 = vadd.f32 %v3005_v52, %v2912_v21 }
 0x214   :  { %v1460_v61 = vmul.f32 %v2458_v58, %v1206_v4  ;;  %v1209_v6 = vadd.f32 %v3169_v28, %v1208_v16  ;;  %v368_v58 = vadd.f32 %v2992_v29, %v2912_v21  ;;  %v886_v16 = vadd.f32 1.0, %v2478_v44 }
 0x215   :  { %v1463_v55 = vmul.f32 %v2468_v43, %v1217_v62  ;;  %v2480_v23 = vpop.eup %2479  ;;  %2487 = vpow2.f32 %v1890_v60  ;;  %v384_v25 = vadd.f32 %v3013_v9, %v2912_v21 }
 0x216   :  { %v1461_v13 = vmul.f32 %v2470_v37, %v1209_v6  ;;  %v1891_v50 = vmul.f32 -1.442695, %v368_v58  ;;  %2489 = vrcp.f32 %v884_v40 }
 0x217   :  { %v2087_v31 = vpack.c.bf16 %v1463_v55, %v1462_v57  ;;  %v885_v55 = vadd.f32 1.0, %v2476_v42 }
 0x218   :  { %v2082_v34 = vpack.c.bf16 %v1461_v13, %v1460_v61  ;;  %v1893_v61 = vmul.f32 -1.442695, %v378_v45  ;;  %2491 = vpow2.f32 %v1891_v50 }
 0x219   :  { %2239 = vst [vmem:[#allocation8 + $0x8] sm:$0xff] %v2087_v31   ;;  %2493 = vpow2.f32 %v1892_v7 }
 0x21a   :  { %2083 = vst [vmem:[#allocation8] sm:$0xff] %v2082_v34   ;;  %2495 = vrcp.f32 %v886_v16  ;;  %v388_v34 = vadd.f32 %v3019_v18, %v2912_v21 }
 0x21b   :  { %v2482_v12 = vpop.eup %2481  ;;  %2497 = vpow2.f32 %v1893_v61  ;;  %v404_v61 = vadd.f32 %v3042_v24, %v2912_v21 }
 0x21c   :  { %v2484_v62 = vpop.eup %2483  ;;  %v887_v37 = vadd.f32 1.0, %v2482_v12  ;;  %v1895_v45 = vmul.f32 -1.442695, %v388_v34 }
 0x21d   :  { %v2486_v38 = vpop.eup %2485 }
 0x21e   :  { %2499 = vrcp.f32 %v887_v37  ;;  %v408_v37 = vadd.f32 %v3048_v33, %v2912_v21 }
 0x21f   :  { %2501 = vrcp.f32 %v885_v55  ;;  %v2488_v31 = vpop.eup %2487  ;;  %v414_v55 = vadd.f32 %v3058_v10, %v2912_v21 }
 0x220   :  { %v2332_v1 = vpop.f32.mrb[36].mxu1  ;;  %v2490_v48 = vpop.eup %2489  ;;  %v888_v60 = vadd.f32 1.0, %v2488_v31 }
 0x221   :  { %v1230_v49 = vadd.f32 %v2332_v1, %v3169_v28  ;;  %v1221_v63 = vpop.f32.mrb[37].mxu1  ;;  %v398_v1 = vadd.f32 %v3033_v53, %v2912_v21 }
 0x222   :  { %v1222_v4 = vadd.f32 %v3169_v28, %v1221_v63  ;;  %v2333_v29 = vpop.f32.mrb[38].mxu1  ;;  %v2492_v58 = vpop.eup %2491 }
 0x223   :  { %v1466_v15 = vmul.f32 %v2480_v23, %v1230_v49  ;;  %v1233_v47 = vadd.f32 %v2333_v29, %v3169_v28  ;;  %v1224_v57 = vpop.f32.mrb[39].mxu1  ;;  %v2494_v42 = vpop.eup %2493  ;;  %v1896_v23 = vmul.f32 -1.442695, %v394_v0 }
 0x224   :  { %v1464_v43 = vmul.f32 %v2474_v19, %v1222_v4  ;;  %v1225_v52 = vadd.f32 %v3169_v28, %v1224_v57  ;;  %v1894_v19 = vmul.f32 -1.442695, %v384_v25  ;;  %v2496_v9 = vpop.eup %2495  ;;  %v890_v12 = vadd.f32 1.0, %v2494_v42 }
 0x225   :  { %v1467_v6 = vmul.f32 %v2484_v62, %v1233_v47  ;;  %v2498_v63 = vpop.eup %2497  ;;  %v1897_v47 = vmul.f32 -1.442695, %v398_v1 }
 0x226   :  { %v1465_v22 = vmul.f32 %v2486_v38, %v1225_v52  ;;  %2503 = vpow2.f32 %v1894_v19  ;;  %v891_v62 = vadd.f32 1.0, %v2498_v63  ;;  %v1899_v19 = vmul.f32 -1.442695, %v408_v37 }
 0x227   :  { %v2097_v11 = vpack.c.bf16 %v1467_v6, %v1466_v15  ;;  %2505 = vrcp.f32 %v888_v60  ;;  %v1900_v60 = vmul.f32 -1.442695, %v414_v55 }
 0x228   :  { %v2092_v13 = vpack.c.bf16 %v1465_v22, %v1464_v43  ;;  %v2500_v29 = vpop.eup %2499  ;;  %2507 = vpow2.f32 %v1895_v45  ;;  %v889_v43 = vadd.f32 1.0, %v2492_v58 }
 0x229   :  { %2241 = vst [vmem:[#allocation8 + $0x18] sm:$0xff] %v2097_v11   ;;  %v2502_v15 = vpop.eup %2501  ;;  %2509 = vpow2.f32 %v1896_v23 }
 0x22a   :  { %2240 = vst [vmem:[#allocation8 + $0x10] sm:$0xff] %v2092_v13   ;;  %2511 = vrcp.f32 %v890_v12  ;;  %v1898_v13 = vmul.f32 -1.442695, %v404_v61  ;;  %v424_v12 = vadd.f32 %v3067_v17, %v2912_v21 }
 0x22b   :  { %2513 = vpow2.f32 %v1897_v47  ;;  %v434_v47 = vadd.f32 %v3073_v20, %v2912_v21 }
 0x22c   :  { %2515 = vrcp.f32 %v891_v62  ;;  %v1902_v62 = vmul.f32 -1.442695, %v424_v12 }
 0x22d   :  { %2517 = vrcp.f32 %v889_v43 }
 0x22e   :  { %2519 = vpow2.f32 %v1898_v13 }
 0x230   :  { %v2336_v32 = vpop.f32.mrb[40].mxu1  ;;  %v2504_v6 = vpop.eup %2503 }
 0x231   :  { %v1246_v44 = vadd.f32 %v2336_v32, %v3169_v28  ;;  %v1237_v40 = vpop.f32.mrb[41].mxu1  ;;  %v2506_v22 = vpop.eup %2505  ;;  %v892_v34 = vadd.f32 1.0, %v2504_v6 }
 0x232   :  { %v1238_v49 = vadd.f32 %v3169_v28, %v1237_v40  ;;  %v2337_v18 = vpop.f32.mrb[42].mxu1  ;;  %v2508_v11 = vpop.eup %2507 }
 0x233   :  { %v1470_v50 = vmul.f32 %v2496_v9, %v1246_v44  ;;  %v1249_v41 = vadd.f32 %v2337_v18, %v3169_v28  ;;  %v1240_v4 = vpop.f32.mrb[43].mxu1  ;;  %v2510_v31 = vpop.eup %2509  ;;  %2521 = vrcp.f32 %v892_v34 }
 0x234   :  { %v1468_v7 = vmul.f32 %v2490_v48, %v1238_v49  ;;  %v1241_v53 = vadd.f32 %v3169_v28, %v1240_v4  ;;  %v418_v48 = vadd.f32 %v3062_v27, %v2912_v21  ;;  %v2512_v24 = vpop.eup %2511  ;;  %v894_v9 = vadd.f32 1.0, %v2510_v31 }
 0x235   :  { %v1471_v57 = vmul.f32 %v2500_v29, %v1249_v41  ;;  %v2514_v42 = vpop.eup %2513  ;;  %2523 = vpow2.f32 %v1899_v19  ;;  %v893_v41 = vadd.f32 1.0, %v2508_v11  ;;  %v1904_v11 = vmul.f32 -1.442695, %v434_v47 }
 0x236   :  { %v1469_v16 = vmul.f32 %v2502_v15, %v1241_v53  ;;  %v2516_v40 = vpop.eup %2515  ;;  %v1901_v18 = vmul.f32 -1.442695, %v418_v48  ;;  %v895_v23 = vadd.f32 1.0, %v2514_v42  ;;  %2525 = vpow2.f32 %v1900_v60 }
 0x237   :  { %v2107_v52 = vpack.c.bf16 %v1471_v57, %v1470_v50  ;;  %v2518_v49 = vpop.eup %2517  ;;  %2527 = vrcp.f32 %v894_v9  ;;  %v428_v53 = vadd.f32 %v3070_v51, %v2912_v21  ;;  %v454_v9 = vadd.f32 %v3085_v8, %v2912_v21 }
 0x238   :  { %v2102_v38 = vpack.c.bf16 %v1469_v16, %v1468_v7  ;;  %2529 = vpow2.f32 %v1901_v18  ;;  %v2520_v7 = vpop.eup %2519 }
 0x239   :  { %2243 = vst [vmem:[#allocation8 + $0x28] sm:$0xff] %v2107_v52   ;;  %2531 = vrcp.f32 %v895_v23  ;;  %v896_v52 = vadd.f32 1.0, %v2520_v7  ;;  %v1903_v37 = vmul.f32 -1.442695, %v428_v53  ;;  %v458_v23 = vadd.f32 %v3088_v46, %v2912_v21 }
 0x23a   :  { %2242 = vst [vmem:[#allocation8 + $0x20] sm:$0xff] %v2102_v38   ;;  %2533 = vrcp.f32 %v893_v41  ;;  %v438_v38 = vadd.f32 %v3076_v35, %v2912_v21  ;;  %v1908_v7 = vmul.f32 -1.442695, %v454_v9 }
 0x23b   :  { %2535 = vpow2.f32 %v1902_v62 }
 0x23c   :  { %2537 = vrcp.f32 %v896_v52 }
 0x23d   :  { %v2522_v15 = vpop.eup %2521  ;;  %2539 = vpow2.f32 %v1903_v37 }
 0x23e   :  { %2541 = vpow2.f32 %v1904_v11 }
 0x23f   :  { %v2524_v57 = vpop.eup %2523 }
 0x240   :  { %v2340_v25 = vpop.f32.mrb[44].mxu1  ;;  %v2526_v43 = vpop.eup %2525 }
 0x241   :  { %v1262_v0 = vadd.f32 %v2340_v25, %v3169_v28  ;;  %v1253_v58 = vpop.f32.mrb[45].mxu1  ;;  %v2528_v17 = vpop.eup %2527  ;;  %v898_v34 = vadd.f32 1.0, %v2526_v43  ;;  %v1909_v43 = vmul.f32 -1.442695, %v458_v23 }
 0x242   :  { %v1254_v32 = vadd.f32 %v3169_v28, %v1253_v58  ;;  %v2341_v33 = vpop.f32.mrb[46].mxu1  ;;  %v2530_v55 = vpop.eup %2529  ;;  %v1905_v58 = vmul.f32 -1.442695, %v438_v38 }
 0x243   :  { %v1474_v1 = vmul.f32 %v2512_v24, %v1262_v0  ;;  %v1265_v10 = vadd.f32 %v2341_v33, %v3169_v28  ;;  %v1256_v44 = vpop.f32.mrb[47].mxu1  ;;  %v2532_v31 = vpop.eup %2531  ;;  %v899_v19 = vadd.f32 1.0, %v2530_v55  ;;  %v897_v33 = vadd.f32 1.0, %v2524_v57 }
 0x244   :  { %v1472_v45 = vmul.f32 %v2506_v22, %v1254_v32  ;;  %v1257_v27 = vadd.f32 %v3169_v28, %v1256_v44  ;;  %v2534_v0 = vpop.eup %2533  ;;  %2543 = vrcp.f32 %v898_v34  ;;  %v448_v44 = vadd.f32 %v3082_v14, %v2912_v21 }
 0x245   :  { %v1475_v63 = vmul.f32 %v2516_v40, %v1265_v10  ;;  %2545 = vpow2.f32 %v1905_v58  ;;  %v2536_v10 = vpop.eup %2535  ;;  %v468_v55 = vadd.f32 %v3094_v5, %v2912_v21 }
 0x246   :  { %v1473_v50 = vmul.f32 %v2518_v49, %v1257_v27  ;;  %2547 = vrcp.f32 %v899_v19  ;;  %v2538_v40 = vpop.eup %2537 }
 0x247   :  { %v2117_v4 = vpack.c.bf16 %v1475_v63, %v1474_v1  ;;  %2549 = vrcp.f32 %v897_v33  ;;  %v444_v1 = vadd.f32 %v3079_v3, %v2912_v21  ;;  %v900_v63 = vadd.f32 1.0, %v2536_v10 }
 0x248   :  { %v2112_v29 = vpack.c.bf16 %v1473_v50, %v1472_v45  ;;  %v2540_v45 = vpop.eup %2539 }
 0x249   :  { %2245 = vst [vmem:[#allocation8 + $0x38] sm:$0xff] %v2117_v4   ;;  %v1906_v27 = vmul.f32 -1.442695, %v444_v1  ;;  %v2542_v18 = vpop.eup %2541  ;;  %v1907_v4 = vmul.f32 -1.442695, %v448_v44 }
 0x24a   :  { %2244 = vst [vmem:[#allocation8 + $0x30] sm:$0xff] %v2112_v29   ;;  %v902_v57 = vadd.f32 1.0, %v2542_v18 }
 0x24b   :  { %2551 = vpow2.f32 %v1906_v27 }
 0x24c   :  { %2553 = vrcp.f32 %v900_v63 }
 0x24d   :  { %2555 = vpow2.f32 %v1907_v4 }
 0x24e   :  { %v2544_v3 = vpop.eup %2543  ;;  %2557 = vpow2.f32 %v1908_v7 }
 0x24f   :  { %v2546_v12 = vpop.eup %2545  ;;  %2559 = vrcp.f32 %v902_v57 }
 0x250   :  { %v2344_v16 = vpop.f32.mrb[48].mxu1  ;;  %v2548_v47 = vpop.eup %2547  ;;  %v903_v38 = vadd.f32 1.0, %v2546_v12  ;;  %2561 = vpow2.f32 %v1909_v43 }
 0x251   :  { %v1278_v61 = vadd.f32 %v2344_v16, %v3169_v28  ;;  %v1269_v6 = vpop.f32.mrb[49].mxu1  ;;  %v2550_v16 = vpop.eup %2549 }
 0x252   :  { %v1270_v22 = vadd.f32 %v3169_v28, %v1269_v6  ;;  %v2345_v51 = vpop.f32.mrb[50].mxu1  ;;  %v901_v6 = vadd.f32 1.0, %v2540_v45  ;;  %2563 = vrcp.f32 %v903_v38 }
 0x253   :  { %v1478_v13 = vmul.f32 %v2528_v17, %v1278_v61  ;;  %v1281_v20 = vadd.f32 %v2345_v51, %v3169_v28  ;;  %v1272_v25 = vpop.f32.mrb[51].mxu1 }
 0x254   :  { %v1476_v48 = vmul.f32 %v2522_v15, %v1270_v22  ;;  %v1273_v35 = vadd.f32 %v3169_v28, %v1272_v25  ;;  %2565 = vrcp.f32 %v901_v6  ;;  %v464_v22 = vadd.f32 %v3091_v54, %v2912_v21 }
 0x255   :  { %v1479_v24 = vmul.f32 %v2532_v31, %v1281_v20  ;;  %v2552_v51 = vpop.eup %2551 }
 0x256   :  { %v1477_v32 = vmul.f32 %v2534_v0, %v1273_v35  ;;  %v2554_v11 = vpop.eup %2553  ;;  %v1910_v25 = vmul.f32 -1.442695, %v464_v22  ;;  %v478_v35 = vadd.f32 %v3100_v56, %v2912_v21 }
 0x257   :  { %v2127_v42 = vpack.c.bf16 %v1479_v24, %v1478_v13  ;;  %v474_v13 = vadd.f32 %v3097_v39, %v2912_v21  ;;  %v2556_v20 = vpop.eup %2555  ;;  %v1911_v24 = vmul.f32 -1.442695, %v468_v55 }
 0x258   :  { %v2122_v60 = vpack.c.bf16 %v1477_v32, %v1476_v48  ;;  %v2558_v34 = vpop.eup %2557  ;;  %v904_v48 = vadd.f32 1.0, %v2552_v51  ;;  %2567 = vpow2.f32 %v1910_v25  ;;  %v1913_v9 = vmul.f32 -1.442695, %v478_v35 }
 0x259   :  { %2247 = vst [vmem:[#allocation8 + $0x48] sm:$0xff] %v2127_v42   ;;  %v2560_v54 = vpop.eup %2559  ;;  %v1912_v33 = vmul.f32 -1.442695, %v474_v13  ;;  %v906_v10 = vadd.f32 1.0, %v2558_v34  ;;  %v905_v18 = vadd.f32 1.0, %v2556_v20 }
 0x25a   :  { %2246 = vst [vmem:[#allocation8 + $0x40] sm:$0xff] %v2122_v60   ;;  %v2562_v32 = vpop.eup %2561  ;;  %2569 = vrcp.f32 %v904_v48 }
 0x25b   :  { %v907_v27 = vadd.f32 1.0, %v2562_v32  ;;  %2571 = vpow2.f32 %v1911_v24  ;;  %v3395_v24 = vld [vmem:[#allocation31_spill] sm:$0xff] }
 0x25c   :  { %v2564_v1 = vpop.eup %2563  ;;  %2573 = vpow2.f32 %v1912_v33  ;;  %v3396_v33 = vld [vmem:[#allocation32_spill] sm:$0xff] }
 0x25d   :  { %2575 = vrcp.f32 %v906_v10 }
 0x25e   :  { %2577 = vpow2.f32 %v1913_v9 }
 0x25f   :  { %2579 = vrcp.f32 %v907_v27 }
 0x260   :  { %v2348_v49 = vpop.f32.mrb[52].mxu1  ;;  %2581 = vrcp.f32 %v905_v18 }
 0x261   :  { %v1294_v50 = vadd.f32 %v2348_v49, %v3169_v28  ;;  %v1285_v41 = vpop.f32.mrb[53].mxu1 }
 0x262   :  { %v1286_v29 = vadd.f32 %v3169_v28, %v1285_v41  ;;  %v2349_v14 = vpop.f32.mrb[54].mxu1 }
 0x263   :  { %v1482_v53 = vmul.f32 %v2544_v3, %v1294_v50  ;;  %v1297_v8 = vadd.f32 %v2349_v14, %v3169_v28  ;;  %v1288_v15 = vpop.f32.mrb[55].mxu1  ;;  %v484_v50 = vadd.f32 %v3103_v30, %v2912_v21  ;;  %v488_v3 = vadd.f32 %v3106_v26, %v2912_v21 }
 0x264   :  { %v1480_v62 = vmul.f32 %v2538_v40, %v1286_v29  ;;  %v1289_v46 = vadd.f32 %v3169_v28, %v1288_v15  ;;  %v2566_v40 = vpop.eup %2565  ;;  %v3392_v29 = vld [vmem:[#allocation28_spill] sm:$0xff] }
 0x265   :  { %v1483_v52 = vmul.f32 %v2548_v47, %v1297_v8  ;;  %v2568_v41 = vpop.eup %2567  ;;  %v494_v14 = vadd.f32 %v3392_v29, %v2912_v21  ;;  %v1914_v7 = vmul.f32 -1.442695, %v484_v50  ;;  %v3393_v47 = vld [vmem:[#allocation29_spill] sm:$0xff] }
 0x266   :  { %v1481_v61 = vmul.f32 %v2550_v16, %v1289_v46  ;;  %v2570_v4 = vpop.eup %2569  ;;  %v908_v15 = vadd.f32 1.0, %v2568_v41  ;;  %v498_v57 = vadd.f32 %v3393_v47, %v2912_v21  ;;  %v1915_v16 = vmul.f32 -1.442695, %v488_v3 }
 0x267   :  { %v2137_v17 = vpack.c.bf16 %v1483_v52, %v1482_v53  ;;  %v2572_v12 = vpop.eup %2571  ;;  %v1916_v38 = vmul.f32 -1.442695, %v494_v14  ;;  %2583 = vpow2.f32 %v1914_v7 }
 0x268   :  { %v2132_v37 = vpack.c.bf16 %v1481_v61, %v1480_v62  ;;  %v2574_v8 = vpop.eup %2573  ;;  %2585 = vrcp.f32 %v908_v15  ;;  %v1917_v13 = vmul.f32 -1.442695, %v498_v57  ;;  %v909_v34 = vadd.f32 1.0, %v2572_v12 }
 0x269   :  { %2249 = vst [vmem:[#allocation8 + $0x58] sm:$0xff] %v2137_v17   ;;  %v2576_v30 = vpop.eup %2575  ;;  %v910_v22 = vadd.f32 1.0, %v2574_v8  ;;  %2587 = vpow2.f32 %v1915_v16 }
 0x26a   :  { %2248 = vst [vmem:[#allocation8 + $0x50] sm:$0xff] %v2132_v37   ;;  %v2578_v52 = vpop.eup %2577  ;;  %2589 = vpow2.f32 %v1916_v38 }
 0x26b   :  { %v2580_v37 = vpop.eup %2579  ;;  %v911_v25 = vadd.f32 1.0, %v2578_v52  ;;  %2591 = vrcp.f32 %v910_v22 }
 0x26c   :  { %2593 = vpow2.f32 %v1917_v13  ;;  %v538_v13 = vadd.f32 %v3136_v2, %v2912_v21 }
 0x26d   :  { %2595 = vrcp.f32 %v911_v25 }
 0x26e   :  { %2597 = vrcp.f32 %v909_v34 }
 0x270   :  { %v2352_v31 = vpop.f32.mrb[56].mxu1 }
 0x271   :  { %v1310_v0 = vadd.f32 %v2352_v31, %v3169_v28  ;;  %v1301_v58 = vpop.f32.mrb[57].mxu1 }
 0x272   :  { %v1302_v19 = vadd.f32 %v3169_v28, %v1301_v58  ;;  %v2353_v5 = vpop.f32.mrb[58].mxu1 }
 0x273   :  { %v1486_v42 = vmul.f32 %v2560_v54, %v1310_v0  ;;  %v1313_v39 = vadd.f32 %v2353_v5, %v3169_v28  ;;  %v1304_v60 = vpop.f32.mrb[59].mxu1  ;;  %v3394_v0 = vld [vmem:[#allocation30_spill] sm:$0xff] }
 0x274   :  { %v1484_v44 = vmul.f32 %v2554_v11, %v1302_v19  ;;  %v1305_v56 = vadd.f32 %v3169_v28, %v1304_v60  ;;  %v2582_v11 = vpop.eup %2581  ;;  %v504_v58 = vadd.f32 %v3394_v0, %v2912_v21  ;;  %v508_v19 = vadd.f32 %v3395_v24, %v2912_v21 }
 0x275   :  { %v1487_v45 = vmul.f32 %v2564_v1, %v1313_v39  ;;  %v2584_v54 = vpop.eup %2583 }
 0x276   :  { %v1485_v49 = vmul.f32 %v2566_v40, %v1305_v56  ;;  %v2586_v5 = vpop.eup %2585  ;;  %v1918_v32 = vmul.f32 -1.442695, %v504_v58  ;;  %v912_v10 = vadd.f32 1.0, %v2584_v54  ;;  %v1919_v27 = vmul.f32 -1.442695, %v508_v19 }
 0x277   :  { %v2147_v63 = vpack.c.bf16 %v1487_v45, %v1486_v42  ;;  %v514_v42 = vadd.f32 %v3396_v33, %v2912_v21  ;;  %v2588_v39 = vpop.eup %2587 }
 0x278   :  { %v2142_v23 = vpack.c.bf16 %v1485_v49, %v1484_v44  ;;  %v2590_v1 = vpop.eup %2589  ;;  %v3397_v44 = vld [vmem:[#allocation33_spill] sm:$0xff]  ;;  %2599 = vpow2.f32 %v1918_v32  ;;  %v913_v57 = vadd.f32 1.0, %v2588_v39  ;;  %v3401_v39 = vld [vmem:[#allocation15_spill] sm:$0xff] }
 0x279   :  { %2251 = vst [vmem:[#allocation8 + $0x68] sm:$0xff] %v2147_v63   ;;  %v518_v56 = vadd.f32 %v3397_v44, %v2912_v21  ;;  %v2592_v45 = vpop.eup %2591  ;;  %v914_v29 = vadd.f32 1.0, %v2590_v1  ;;  %2601 = vrcp.f32 %v912_v10  ;;  %v1925_v1 = vmul.f32 -1.442695, %v538_v13 }
 0x27a   :  { %2250 = vst [vmem:[#allocation8 + $0x60] sm:$0xff] %v2142_v23   ;;  %v2594_v63 = vpop.eup %2593  ;;  %v1920_v23 = vmul.f32 -1.442695, %v514_v42  ;;  %2603 = vpow2.f32 %v1919_v27 }
 0x27b   :  { %v915_v15 = vadd.f32 1.0, %v2594_v63 }
 0x27c   :  { %2605 = vpow2.f32 %v1920_v23  ;;  %v3403_v23 = vld [vmem:[#allocation16_spill] sm:$0xff] }
 0x27d   :  { %2607 = vrcp.f32 %v914_v29  ;;  %v3405_v29 = vld [vmem:[#allocation19_spill] sm:$0xff] }
 0x280   :  { %v2356_v53 = vpop.f32.mrb[60].mxu1 }
 0x281   :  { %v1326_v62 = vadd.f32 %v2356_v53, %v3169_v28  ;;  %v1317_v46 = vpop.f32.mrb[61].mxu1  ;;  %v1921_v53 = vmul.f32 -1.442695, %v518_v56 }
 0x282   :  { %v1318_v43 = vadd.f32 %v3169_v28, %v1317_v46  ;;  %v2357_v26 = vpop.f32.mrb[62].mxu1 }
 0x283   :  { %v1490_v61 = vmul.f32 %v2576_v30, %v1326_v62  ;;  %v1329_v6 = vadd.f32 %v2357_v26, %v3169_v28  ;;  %v1320_v17 = vpop.f32.mrb[63].mxu1  ;;  %2609 = vpow2.f32 %v1921_v53  ;;  %v3398_v30 = vld [vmem:[#allocation12_spill] sm:$0xff]  ;;  %v3399_v26 = vld [vmem:[#allocation34_spill] sm:$0xff] }
 0x284   :  { %v1488_v51 = vmul.f32 %v2570_v4, %v1318_v43  ;;  %v1321_v55 = vadd.f32 %v3169_v28, %v1320_v17  ;;  %v2596_v4 = vpop.eup %2595  ;;  %2611 = vrcp.f32 %v915_v15  ;;  %v544_v16 = vadd.f32 %v3398_v30, %v2912_v21  ;;  %v3406_v15 = vld [vmem:[#allocation17_spill] sm:$0xff] }
 0x285   :  { %v1491_v20 = vmul.f32 %v2580_v37, %v1329_v6  ;;  %v2598_v7 = vpop.eup %2597  ;;  %2613 = vrcp.f32 %v913_v57  ;;  %v524_v52 = vadd.f32 %v3399_v26, %v2912_v21  ;;  %v534_v17 = vadd.f32 %v3133_v59, %v2912_v21  ;;  %v3400_v59 = vld [vmem:[#allocation14_spill] sm:$0xff] }
 0x286   :  { %v1489_v31 = vmul.f32 %v2582_v11, %v1321_v55  ;;  %v2600_v43 = vpop.eup %2599  ;;  %v1926_v38 = vmul.f32 -1.442695, %v544_v16  ;;  %v554_v0 = vadd.f32 %v3400_v59, %v2912_v21 }
 0x287   :  { %v2157_v48 = vpack.c.bf16 %v1491_v20, %v1490_v61  ;;  %v528_v61 = vadd.f32 %v3130_v36, %v2912_v21  ;;  %v2602_v6 = vpop.eup %2601  ;;  %v916_v22 = vadd.f32 1.0, %v2600_v43  ;;  %v1922_v11 = vmul.f32 -1.442695, %v524_v52 }
 0x288   :  { %v2152_v35 = vpack.c.bf16 %v1489_v31, %v1488_v51  ;;  %v2604_v37 = vpop.eup %2603  ;;  %2615 = vpow2.f32 %v1926_v38  ;;  %v1924_v58 = vmul.f32 -1.442695, %v534_v17 }
 0x289   :  { %2253 = vst [vmem:[#allocation8 + $0x78] sm:$0xff] %v2157_v48   ;;  %v2606_v55 = vpop.eup %2605  ;;  %v1923_v34 = vmul.f32 -1.442695, %v528_v61  ;;  %2617 = vrcp.f32 %v916_v22 }
 0x28a   :  { %2252 = vst [vmem:[#allocation8 + $0x70] sm:$0xff] %v2152_v35   ;;  %v2608_v31 = vpop.eup %2607  ;;  %v918_v2 = vadd.f32 1.0, %v2606_v55  ;;  %2619 = vpow2.f32 %v1922_v11 }
 0x28b   :  { %2621 = vpow2.f32 %v1923_v34 }
 0x28c   :  { %2623 = vpow2.f32 %v1924_v58  ;;  %v3407_v58 = vld [vmem:[#allocation22_spill] sm:$0xff] }
 0x28d   :  { %v2610_v35 = vpop.eup %2609  ;;  %2625 = vrcp.f32 %v918_v2 }
 0x28e   :  { %v919_v44 = vadd.f32 1.0, %v2610_v35  ;;  %2627 = vpow2.f32 %v1925_v1 }
 0x290   :  { %v2360_v60 = vpop.f32.mrb[64].mxu1  ;;  %2629 = vrcp.f32 %v919_v44 }
 0x291   :  { %v1342_v40 = vadd.f32 %v2360_v60, %v3169_v28  ;;  %v1333_v9 = vpop.f32.mrb[65].mxu1  ;;  %v558_v60 = vadd.f32 %v3401_v39, %v2912_v21 }
 0x292   :  { %v1334_v49 = vadd.f32 %v3169_v28, %v1333_v9  ;;  %v2361_v18 = vpop.f32.mrb[66].mxu1 }
 0x293   :  { %v1494_v50 = vmul.f32 %v2592_v45, %v1342_v40  ;;  %v1345_v41 = vadd.f32 %v2361_v18, %v3169_v28  ;;  %v1336_v3 = vpop.f32.mrb[67].mxu1  ;;  %v917_v40 = vadd.f32 1.0, %v2604_v37  ;;  %v1928_v45 = vmul.f32 -1.442695, %v554_v0  ;;  %v3402_v18 = vld [vmem:[#allocation13_spill] sm:$0xff] }
 0x294   :  { %v1492_v14 = vmul.f32 %v2586_v5, %v1334_v49  ;;  %v1337_v12 = vadd.f32 %v3169_v28, %v1336_v3  ;;  %v2612_v5 = vpop.eup %2611  ;;  %v1929_v49 = vmul.f32 -1.442695, %v558_v60  ;;  %v548_v63 = vadd.f32 %v3402_v18, %v2912_v21  ;;  %v3404_v3 = vld [vmem:[#allocation18_spill] sm:$0xff]  ;;  %v3410_v60 = vld [vmem:[#allocation21_spill] sm:$0xff] }
 0x295   :  { %v1495_v8 = vmul.f32 %v2596_v4, %v1345_v41  ;;  %v2614_v42 = vpop.eup %2613  ;;  %2631 = vrcp.f32 %v917_v40  ;;  %v574_v4 = vadd.f32 %v3404_v3, %v2912_v21  ;;  %v588_v1 = vadd.f32 %v3410_v60, %v2912_v21 }
 0x296   :  { %v1493_v47 = vmul.f32 %v2598_v7, %v1337_v12  ;;  %v2616_v41 = vpop.eup %2615  ;;  %2633 = vpow2.f32 %v1928_v45  ;;  %v1927_v7 = vmul.f32 -1.442695, %v548_v63  ;;  %v3411_v63 = vld [vmem:[#allocation26_spill] sm:$0xff] }
 0x297   :  { %v2167_v62 = vpack.c.bf16 %v1495_v8, %v1494_v50  ;;  %v564_v50 = vadd.f32 %v3403_v23, %v2912_v21  ;;  %2635 = vpow2.f32 %v1929_v49  ;;  %v2618_v12 = vpop.eup %2617  ;;  %v614_v23 = vadd.f32 %v3411_v63, %v2912_v21 }
 0x298   :  { %v2162_v46 = vpack.c.bf16 %v1493_v47, %v1492_v14  ;;  %v578_v14 = vadd.f32 %v3405_v29, %v2912_v21  ;;  %v2620_v53 = vpop.eup %2619  ;;  %v568_v47 = vadd.f32 %v3406_v15, %v2912_v21  ;;  %2637 = vpow2.f32 %v1927_v7 }
 0x299   :  { %2255 = vst [vmem:[#allocation8 + $0x88] sm:$0xff] %v2167_v62   ;;  %v1930_v8 = vmul.f32 -1.442695, %v564_v50  ;;  %v2622_v57 = vpop.eup %2621  ;;  %v1932_v62 = vmul.f32 -1.442695, %v574_v4 }
 0x29a   :  { %2254 = vst [vmem:[#allocation8 + $0x80] sm:$0xff] %v2162_v46   ;;  %v2624_v30 = vpop.eup %2623  ;;  %v1933_v16 = vmul.f32 -1.442695, %v578_v14  ;;  %v1931_v17 = vmul.f32 -1.442695, %v568_v47  ;;  %v921_v0 = vadd.f32 1.0, %v2622_v57 }
 0x29b   :  { %v2626_v52 = vpop.eup %2625  ;;  %2639 = vpow2.f32 %v1930_v8  ;;  %v922_v11 = vadd.f32 1.0, %v2624_v30 }
 0x29c   :  { %2641 = vpow2.f32 %v1932_v62  ;;  %v3414_v62 = vld [vmem:[#allocation25_spill] sm:$0xff] }
 0x29d   :  { %2643 = vpow2.f32 %v1933_v16 }
 0x29e   :  { %2645 = vpow2.f32 %v1931_v17 }
 0x29f   :  { %2647 = vrcp.f32 %v922_v11 }
 0x2a0   :  { %v2364_v51 = vpop.f32.mrb[68].mxu1 }
 0x2a1   :  { %v1358_v20 = vadd.f32 %v2364_v51, %v3169_v28  ;;  %v1349_v25 = vpop.f32.mrb[69].mxu1 }
 0x2a2   :  { %v1350_v36 = vadd.f32 %v3169_v28, %v1349_v25  ;;  %v2365_v48 = vpop.f32.mrb[70].mxu1 }
 0x2a3   :  { %v1498_v54 = vmul.f32 %v2608_v31, %v1358_v20  ;;  %v1361_v24 = vadd.f32 %v2365_v48, %v3169_v28  ;;  %v1352_v19 = vpop.f32.mrb[71].mxu1  ;;  %v920_v31 = vadd.f32 1.0, %v2620_v53  ;;  %v3324_v53 = vld [vmem:[%s3367_s4] ss:$0 sm:$0xff]  ;;  %s2806_s4 = smov [#allocation8]  }
 0x2a4   :  { %v1496_v32 = vmul.f32 %v2602_v6, %v1350_v36  ;;  %v1353_v33 = vadd.f32 %v3169_v28, %v1352_v19  ;;  %v2628_v6 = vpop.eup %2627  ;;  %v924_v19 = vadd.f32 1.0, %v2616_v41  ;;  %v3412_v41 = vld [vmem:[#allocation24_spill] sm:$0xff]  ;;  %s1849_s10 = sshll.u32 %s2806_s4, 4  ;;  %s1850_s10 = int_to_ptr.vmem [resolvable:$true] %s1849_s10 }
 0x2a5   :  { %v1499_v10 = vmul.f32 %v2612_v5, %v1361_v24  ;;  %v2630_v55 = vpop.eup %2629  ;;  %v923_v48 = vadd.f32 1.0, %v2628_v6  ;;  %v3408_v5 = vld [vmem:[#allocation20_spill] sm:$0xff]  ;;  %2649 = vrcp.f32 %v920_v31  ;;  %v604_v3 = vadd.f32 %v3412_v41, %v2912_v21  ;;  %s2770_s11 = scalar_lea.vmem %s1850_s10, 4096  ;;  %p2775_p11 = scmp.lt.s32.totalorder %s1850_s10, %s1850_s10 }
 0x2a6   :  { %v1497_v56 = vmul.f32 %v2614_v42, %v1353_v33  ;;  %v2632_v25 = vpop.eup %2631  ;;  %v584_v2 = vadd.f32 %v3408_v5, %v2912_v21  ;;  %v3409_v33 = vld [vmem:[#allocation23_spill] sm:$0xff]  ;;  %p2771_p10 = scmp.ne.s32.totalorder %s1850_s10, %s2770_s11  ;;  %p2776_p12 = scmp.lt.s32.totalorder %s2770_s11, %s2770_s11 }
 0x2a7   :  { %v2177_v9 = vpack.c.bf16 %v1499_v10, %v1498_v54  ;;  %v2634_v36 = vpop.eup %2633  ;;  %v594_v54 = vadd.f32 %v3407_v58, %v2912_v21  ;;  %v598_v42 = vadd.f32 %v3409_v33, %v2912_v21  ;;  %2651 = vrcp.f32 %v923_v48 }
 0x2a8   :  { %v2172_v27 = vpack.c.bf16 %v1497_v56, %v1496_v32  ;;  %v2636_v59 = vpop.eup %2635  ;;  %v926_v32 = vadd.f32 1.0, %v2634_v36  ;;  %2653 = vrcp.f32 %v921_v0  ;;  %v1934_v56 = vmul.f32 -1.442695, %v584_v2  ;;  %p2777_p13 = por %p2776_p12, %p2775_p11 }
 0x2a9   :  { %2257 = vst [vmem:[#allocation8 + $0x98] sm:$0xff] %v2177_v9   ;;  %v927_v39 = vadd.f32 1.0, %v2636_v59  ;;  %v1936_v10 = vmul.f32 -1.442695, %v594_v54  ;;  %v2638_v44 = vpop.eup %2637  ;;  %2655 = vrcp.f32 %v924_v19  ;;  %v1937_v9 = vmul.f32 -1.442695, %v598_v42 }
 0x2aa   :  { %2256 = vst [vmem:[#allocation8 + $0x90] sm:$0xff] %v2172_v27   ;;  %v2640_v40 = vpop.eup %2639  ;;  %2657 = vrcp.f32 %v926_v32  ;;  %v1935_v27 = vmul.f32 -1.442695, %v588_v1  ;;  %v925_v18 = vadd.f32 1.0, %v2638_v44  ;;  %v1938_v17 = vmul.f32 -1.442695, %v604_v3  ;;  %p2778_p0 = pnand %p2777_p13, %p2771_p10 }
 0x2ab   :  { %v2642_v45 = vpop.eup %2641  ;;  %2659 = vrcp.f32 %v927_v39  ;;  %v928_v50 = vadd.f32 1.0, %v2640_v40 }
 0x2ac   :  { %v2644_v49 = vpop.eup %2643  ;;  %2661 = vpow2.f32 %v1936_v10  ;;  %v930_v14 = vadd.f32 1.0, %v2642_v45 }
 0x2ad   :  { %2663 = vpow2.f32 %v1934_v56  ;;  %v2646_v29 = vpop.eup %2645  ;;  %v931_v57 = vadd.f32 1.0, %v2644_v49 }
 0x2ae   :  { %2665 = vpow2.f32 %v1937_v9  ;;  %v2648_v47 = vpop.eup %2647  ;;  %v929_v31 = vadd.f32 1.0, %v2646_v29 }
 0x2af   :  { %2667 = vpow2.f32 %v1935_v27 }
 0x2b0   :  { %v2368_v46 = vpop.f32.mrb[72].mxu1  ;;  %2669 = vrcp.f32 %v925_v18 }
 0x2b1   :  { %v1374_v43 = vadd.f32 %v2368_v46, %v3169_v28  ;;  %v1365_v26 = vpop.f32.mrb[73].mxu1  ;;  %v608_v46 = vadd.f32 %v3414_v62, %v2912_v21  ;;  %2671 = vrcp.f32 %v928_v50 }
 0x2b2   :  { %v1366_v38 = vadd.f32 %v3169_v28, %v1365_v26  ;;  %v2369_v61 = vpop.f32.mrb[74].mxu1  ;;  %v1940_v26 = vmul.f32 -1.442695, %v614_v23  ;;  %2673 = vrcp.f32 %v930_v14 }
 0x2b3   :  { %v1502_v37 = vmul.f32 %v2626_v52, %v1374_v43  ;;  %v1377_v22 = vadd.f32 %v2369_v61, %v3169_v28  ;;  %v1368_v51 = vpop.f32.mrb[75].mxu1  ;;  %v2650_v43 = vpop.eup %2649  ;;  %2675 = vrcp.f32 %v931_v57 }
 0x2b4   :  { %v1500_v13 = vmul.f32 %v2618_v12, %v1366_v38  ;;  %v1369_v20 = vadd.f32 %v3169_v28, %v1368_v51  ;;  %v3413_v12 = vld [vmem:[#allocation27_spill] sm:$0xff]  ;;  %v2652_v6 = vpop.eup %2651  ;;  %2677 = vpow2.f32 %v1940_v26 }
 0x2b5   :  { %v1503_v34 = vmul.f32 %v2630_v55, %v1377_v22  ;;  %v618_v7 = vadd.f32 %v3413_v12, %v2912_v21  ;;  %v2654_v51 = vpop.eup %2653  ;;  %2679 = vpow2.f32 %v1938_v17 }
 0x2b6   :  { %v1501_v35 = vmul.f32 %v2632_v25, %v1369_v20  ;;  %v2656_v11 = vpop.eup %2655 }
 0x2b7   :  { %v2187_v24 = vpack.c.bf16 %v1503_v34, %v1502_v37  ;;  %v1941_v55 = vmul.f32 -1.442695, %v618_v7  ;;  %v2658_v25 = vpop.eup %2657 }
 0x2b8   :  { %v2182_v28 = vpack.c.bf16 %v1501_v35, %v1500_v13  ;;  %v1939_v13 = vmul.f32 -1.442695, %v608_v46  ;;  %v2660_v36 = vpop.eup %2659 }
 0x2b9   :  { %2259 = vst [vmem:[#allocation8 + $0xa8] sm:$0xff] %v2187_v24   ;;  %v2662_v59 = vpop.eup %2661  ;;  %2681 = vpow2.f32 %v1941_v55 }
 0x2ba   :  { %2258 = vst [vmem:[#allocation8 + $0xa0] sm:$0xff] %v2182_v28   ;;  %v2664_v54 = vpop.eup %2663  ;;  %2683 = vpow2.f32 %v1939_v13  ;;  %v934_v42 = vadd.f32 1.0, %v2662_v59 }
 0x2bb   :  { %v2666_v5 = vpop.eup %2665  ;;  %2685 = vrcp.f32 %v929_v31  ;;  %v932_v10 = vadd.f32 1.0, %v2664_v54 }
 0x2bc   :  { %v2668_v33 = vpop.eup %2667  ;;  %v935_v40 = vadd.f32 1.0, %v2666_v5  ;;  %2687 = vrcp.f32 %v934_v42 }
 0x2bd   :  { %v2670_v1 = vpop.eup %2669  ;;  %v933_v27 = vadd.f32 1.0, %v2668_v33  ;;  %2689 = vrcp.f32 %v932_v10 }
 0x2be   :  { %v2672_v56 = vpop.eup %2671  ;;  %2691 = vrcp.f32 %v935_v40 }
 0x2bf   :  { %v2674_v45 = vpop.eup %2673  ;;  %2693 = vrcp.f32 %v933_v27 }
 0x2c0   :  { %v2372_v4 = vpop.f32.mrb[76].mxu1  ;;  %v2676_v18 = vpop.eup %2675 }
 0x2c1   :  { %v1390_v8 = vadd.f32 %v3324_v53, %v2372_v4  ;;  %v1381_v15 = vpop.f32.mrb[77].mxu1  ;;  %v2678_v50 = vpop.eup %2677 }
 0x2c2   :  { %v1382_v30 = vadd.f32 %v3324_v53, %v1381_v15  ;;  %v2373_v16 = vpop.f32.mrb[78].mxu1  ;;  %v2680_v4 = vpop.eup %2679  ;;  %v938_v57 = vadd.f32 1.0, %v2678_v50 }
 0x2c3   :  { %v1506_v52 = vmul.f32 %v2648_v47, %v1390_v8  ;;  %v1393_v38 = vadd.f32 %v3324_v53, %v2373_v16  ;;  %v1384_v61 = vpop.f32.mrb[79].mxu1  ;;  %v2682_v12 = vpop.eup %2681  ;;  %v936_v16 = vadd.f32 1.0, %v2680_v4 }
 0x2c4   :  { %v1504_v37 = vmul.f32 %v2650_v43, %v1382_v30  ;;  %v1385_v22 = vadd.f32 %v3324_v53, %v1384_v61  ;;  %v2684_v47 = vpop.eup %2683  ;;  %v939_v26 = vadd.f32 1.0, %v2682_v12  ;;  %2695 = vrcp.f32 %v938_v57 }
 0x2c5   :  { %v1507_v21 = vmul.f32 %v2652_v6, %v1393_v38  ;;  %v2686_v30 = vpop.eup %2685  ;;  %v937_v38 = vadd.f32 1.0, %v2684_v47  ;;  %2697 = vrcp.f32 %v936_v16 }
 0x2c6   :  { %v1505_v20 = vmul.f32 %v2654_v51, %v1385_v22  ;;  %v2688_v51 = vpop.eup %2687  ;;  %2699 = vrcp.f32 %v939_v26 }
 0x2c7   :  { %v2197_v34 = vpack.c.bf16 %v1507_v21, %v1506_v52  ;;  %2701 = vrcp.f32 %v937_v38 }
 0x2c8   :  { %v2192_v48 = vpack.c.bf16 %v1505_v20, %v1504_v37  ;;  %v2376_v35 = vpop.f32.mrb[80].mxu1 }
 0x2c9   :  { %2261 = vst [vmem:[#allocation8 + $0xb8] sm:$0xff] %v2197_v34   ;;  %v1406_v0 = vadd.f32 %v3324_v53, %v2376_v35  ;;  %v1397_v58 = vpop.f32.mrb[81].mxu1 }
 0x2ca   :  { %2260 = vst [vmem:[#allocation8 + $0xb0] sm:$0xff] %v2192_v48   ;;  %v1398_v24 = vadd.f32 %v3324_v53, %v1397_v58  ;;  %v2377_v19 = vpop.f32.mrb[82].mxu1 }
 0x2cb   :  { %v1510_v2 = vmul.f32 %v2658_v25, %v1406_v0  ;;  %v1409_v28 = vadd.f32 %v3324_v53, %v2377_v19  ;;  %v1400_v32 = vpop.f32.mrb[83].mxu1 }
 0x2cc   :  { %v1508_v39 = vmul.f32 %v2656_v11, %v1398_v24  ;;  %v1401_v60 = vadd.f32 %v3324_v53, %v1400_v32  ;;  %v2690_v11 = vpop.eup %2689 }
 0x2cd   :  { %v1511_v44 = vmul.f32 %v2660_v36, %v1409_v28  ;;  %v2692_v31 = vpop.eup %2691 }
 0x2ce   :  { %v1509_v9 = vmul.f32 %v2670_v1, %v1401_v60  ;;  %v2694_v48 = vpop.eup %2693 }
 0x2cf   :  { %v2207_v49 = vpack.c.bf16 %v1511_v44, %v1510_v2  ;;  %v2696_v5 = vpop.eup %2695 }
 0x2d0   :  { %v2202_v63 = vpack.c.bf16 %v1509_v9, %v1508_v39  ;;  %v2380_v23 = vpop.f32.mrb[84].mxu1  ;;  %v2698_v32 = vpop.eup %2697 }
 0x2d1   :  { %2263 = vst [vmem:[#allocation8 + $0xc8] sm:$0xff] %v2207_v49   ;;  %v1422_v41 = vadd.f32 %v3324_v53, %v2380_v23  ;;  %v1413_v3 = vpop.f32.mrb[85].mxu1  ;;  %v2700_v60 = vpop.eup %2699 }
 0x2d2   :  { %2262 = vst [vmem:[#allocation8 + $0xc0] sm:$0xff] %v2202_v63   ;;  %v1414_v29 = vadd.f32 %v3324_v53, %v1413_v3  ;;  %v2381_v14 = vpop.f32.mrb[86].mxu1  ;;  %v2702_v44 = vpop.eup %2701 }
 0x2d3   :  { %v1514_v7 = vmul.f32 %v2674_v45, %v1422_v41  ;;  %v1425_v8 = vadd.f32 %v3324_v53, %v2381_v14  ;;  %v1416_v15 = vpop.f32.mrb[87].mxu1 }
 0x2d4   :  { %v1512_v62 = vmul.f32 %v2672_v56, %v1414_v29  ;;  %v1417_v46 = vadd.f32 %v3324_v53, %v1416_v15 }
 0x2d5   :  { %v1515_v43 = vmul.f32 %v2676_v18, %v1425_v8 }
 0x2d6   :  { %v1513_v52 = vmul.f32 %v2686_v30, %v1417_v46 }
 0x2d7   :  { %v2217_v61 = vpack.c.bf16 %v1515_v43, %v1514_v7 }
 0x2d8   :  { %v2212_v6 = vpack.c.bf16 %v1513_v52, %v1512_v62  ;;  %v2384_v17 = vpop.f32.mrb[88].mxu1 }
 0x2d9   :  { %2265 = vst [vmem:[#allocation8 + $0xd8] sm:$0xff] %v2217_v61   ;;  %v1438_v37 = vadd.f32 %v3324_v53, %v2384_v17  ;;  %v1429_v22 = vpop.f32.mrb[89].mxu1 }
 0x2da   :  { %2264 = vst [vmem:[#allocation8 + $0xd0] sm:$0xff] %v2212_v6   ;;  %v1430_v55 = vadd.f32 %v3324_v53, %v1429_v22  ;;  %v2385_v21 = vpop.f32.mrb[90].mxu1 }
 0x2db   :  { %v1518_v13 = vmul.f32 %v2688_v51, %v1438_v37  ;;  %v1441_v20 = vadd.f32 %v3324_v53, %v2385_v21  ;;  %v1432_v25 = vpop.f32.mrb[91].mxu1 }
 0x2dc   :  { %v1516_v34 = vmul.f32 %v2690_v11, %v1430_v55  ;;  %v1433_v36 = vadd.f32 %v3324_v53, %v1432_v25 }
 0x2dd   :  { %v1519_v35 = vmul.f32 %v2692_v31, %v1441_v20 }
 0x2de   :  { %v1517_v59 = vmul.f32 %v2694_v48, %v1433_v36 }
 0x2df   :  { %v2227_v0 = vpack.c.bf16 %v1519_v35, %v1518_v13 }
 0x2e0   :  { %v2222_v58 = vpack.c.bf16 %v1517_v59, %v1516_v34  ;;  %v2388_v54 = vpop.f32.mrb[92].mxu1 }
 0x2e1   :  { %2267 = vst [vmem:[#allocation8 + $0xe8] sm:$0xff] %v2227_v0   ;;  %v1454_v24 = vadd.f32 %v3324_v53, %v2388_v54  ;;  %v1445_v19 = vpop.f32.mrb[93].mxu1 }
 0x2e2   :  { %2266 = vst [vmem:[#allocation8 + $0xe0] sm:$0xff] %v2222_v58   ;;  %v1446_v2 = vadd.f32 %v3324_v53, %v1445_v19  ;;  %v2389_v28 = vpop.f32.mrb[94].mxu1 }
 0x2e3   :  { %v1522_v33 = vmul.f32 %v2696_v5, %v1454_v24  ;;  %v1457_v42 = vadd.f32 %v3324_v53, %v2389_v28  ;;  %v1448_v39 = vpop.f32.mrb[95].mxu1 }
 0x2e4   :  { %v1520_v1 = vmul.f32 %v2698_v32, %v1446_v2  ;;  %v1449_v10 = vadd.f32 %v3324_v53, %v1448_v39 }
 0x2e5   :  { %v1523_v56 = vmul.f32 %v2700_v60, %v1457_v42 }
 0x2e6   :  { %v1521_v40 = vmul.f32 %v2702_v44, %v1449_v10 }
 0x2e7   :  { %v2237_v9 = vpack.c.bf16 %v1523_v56, %v1522_v33 }
 0x2e8   :  { %v2232_v45 = vpack.c.bf16 %v1521_v40, %v1520_v1 }
 0x2e9   :  { %2269 = vst [vmem:[#allocation8 + $0xf8] sm:$0xff] %v2237_v9  }
 0x2ea   :  { %2268 = vst [vmem:[#allocation8 + $0xf0] sm:$0xff] %v2232_v45  }
 0x2eb   :  { %2781 = shalt.err (!%p2778_p0)
}
 0x2ec   :  { %s2782_s14 = scalar_lea.hbm %s3368_s5, 4096 }
 0x2ed   :  { %p2783_p1 = scmp.ne.s32.totalorder %s3368_s5, %s2782_s14  ;;  %p2786_p2 = scmp.lt.u32.totalorder %s2782_s14, %s3368_s5 }
 0x2ef   :  { %p2788_p3 = pnand %p2786_p2, %p2783_p1 }
 0x2f1   :  { %2791 = shalt.err (!%p2788_p3)
}
 0x2f2   :  { %1855 = dma.vmem_to_hbm [thread:$0]  %s1850_s10, 4096, %s3368_s5, [#allocation4], %s2803_s0, %s2803_s0, %s2804_s21  }
 0x2f3   :  { %2796 = dma.done.wait [#allocation4], 4096  }
 0x2f4   :  { %2797 = vsyncadd [#allocation4], 4294963200 }
 0x2f5   :  { %1859 = vsyncpa [#allocation3], 1 }
 0x2f6   :  { %1860 = vsyncpa [#allocation6], 1 }
 0x2f7   :  { %1861 = vsyncpa [#allocation4], 1 }

</bundles_post_ra>
